<compile_context>
chip_gen: v7x
topology: tpu7x:2x2x1
jax: 0.10.0
libtpu: 0.0.40
codegen_flags: <defaults>
</compile_context>

<pallas_src>
import jax
import jax.numpy as jnp
from jax.experimental import pallas as pl
from jax.experimental.pallas import tpu as pltpu

# ------------------------- small ViT config -------------------------
PATCH = 16          # patch size (same as vit_base_patch16_224)
IMG = 32            # image size  (small: 2x2 = 4 patches)
IN_CHANS = 3
EMBED = 64          # embed dim   (base uses 768; scaled down)
HEADS = 4
DEPTH = 2           # base uses 12 blocks; scaled down
MLP_RATIO = 4
NUM_CLASSES = 12
HEAD_PAD = 128      # head output padded to a full lane width for a dense store
LN_EPS = 1e-6


# ------------------------- fused ViT kernel -------------------------
def _vit_kernel(patches_ref, patch_w_ref, cls_ref, tok_bias_ref,
                ln1_g_ref, ln1_b_ref, qkv_w_ref, qkv_b_ref,
                proj_w_ref, proj_b_ref, ln2_g_ref, ln2_b_ref,
                fc1_w_ref, fc1_b_ref, fc2_w_ref, fc2_b_ref,
                lnf_g_ref, lnf_b_ref, head_w_ref, head_b_ref,
                out_ref):
    """One grid step == one image: full transformer forward in VMEM."""
    Dh = EMBED // HEADS
    scale = float(Dh) ** -0.5
    inv_sqrt2 = 0.7071067811865476  # 1/sqrt(2) for exact erf GELU

    def layer_norm(x, g, b):
        mean = jnp.mean(x, axis=-1, keepdims=True)
        var = jnp.mean(jnp.square(x - mean), axis=-1, keepdims=True)
        return (x - mean) * jax.lax.rsqrt(var + LN_EPS) * g + b

    # ---- patch embed: conv(k=P, s=P) == matmul over flattened patches ----
    # tok_bias already carries patch_b + pos_embed (pos[0] for the cls row).
    tok = jnp.dot(patches_ref[0], patch_w_ref[...],
                  preferred_element_type=jnp.float32)                        # (nP, E)
    h = jnp.concatenate([cls_ref[...], tok], axis=0) + tok_bias_ref[...]     # (T, E)

    for d in range(DEPTH):                      # static unroll over blocks
        # -------- attention sub-block (pre-norm) --------
        y = layer_norm(h, ln1_g_ref[d], ln1_b_ref[d])
        qkv = jnp.dot(y, qkv_w_ref[d],
                      preferred_element_type=jnp.float32) + qkv_b_ref[d]     # (T, 3E)
        heads = []
        for hh in range(HEADS):                 # static unroll over heads
            q = qkv[:, hh * Dh:(hh + 1) * Dh]                                # (T, Dh)
            k = qkv[:, EMBED + hh * Dh:EMBED + (hh + 1) * Dh]                # (T, Dh)
            v = qkv[:, 2 * EMBED + hh * Dh:2 * EMBED + (hh + 1) * Dh]        # (T, Dh)
            # scores = (q @ k^T) * scale ; contract last dims (no transpose)
            s = jax.lax.dot_general(q, k, (((1,), (1,)), ((), ())),
                                    preferred_element_type=jnp.float32)      # (T, T)
            s = s * scale
            s = s - jnp.max(s, axis=-1, keepdims=True)
            p = jnp.exp(s)
            p = p * pl.reciprocal(jnp.sum(p, axis=-1, keepdims=True),
                                  approx=False)
            heads.append(jnp.dot(p, v, preferred_element_type=jnp.float32))  # (T, Dh)
        attn = jnp.concatenate(heads, axis=-1)                               # (T, E)
        attn = jnp.dot(attn, proj_w_ref[d],
                       preferred_element_type=jnp.float32) + proj_b_ref[d]
        h = h + attn

        # -------- MLP sub-block (pre-norm) --------
        y = layer_norm(h, ln2_g_ref[d], ln2_b_ref[d])
        m = jnp.dot(y, fc1_w_ref[d],
                    preferred_element_type=jnp.float32) + fc1_b_ref[d]       # (T, 4E)
        # exact (erf-based) GELU, matching torch.nn.GELU default
        m = 0.5 * m * (1.0 + jax.lax.erf(m * inv_sqrt2))
        h = h + jnp.dot(m, fc2_w_ref[d],
                        preferred_element_type=jnp.float32) + fc2_b_ref[d]

    # final LN applied to the cls-token row only (LN is per-row => identical to
    # normalizing all tokens then taking row 0), then the zero-padded 128-wide
    # classification head -> one unmasked lane-dense store.
    cls_feat = layer_norm(h[0:1, :], lnf_g_ref[...], lnf_b_ref[...])         # (1, E)
    logits = jnp.dot(cls_feat, head_w_ref[...],
                     preferred_element_type=jnp.float32) + head_b_ref[...]   # (1, 128)
    out_ref[0] = logits.astype(out_ref.dtype)


# ------------------------- parameter init -------------------------
def make_params(key):
    n_patches = (IMG // PATCH) ** 2
    T = n_patches + 1
    hidden = EMBED * MLP_RATIO
    cpp = IN_CHANS * PATCH * PATCH

    def nrm(k, shape, std=0.02):
        return std * jax.random.normal(k, shape, dtype=jnp.float32)

    ks = jax.random.split(key, 8)
    return {
        # patch embed (conv weight flattened as (C*P*P, E))
        "patch_w": nrm(ks[0], (cpp, EMBED)),
        "patch_b": jnp.zeros((1, EMBED), jnp.float32),
        "cls_token": nrm(ks[1], (1, EMBED)),
        "pos_embed": nrm(ks[2], (T, EMBED)),
        # per-block params, stacked on a leading DEPTH axis
        "ln1_g": jnp.ones((DEPTH, 1, EMBED), jnp.float32),
        "ln1_b": jnp.zeros((DEPTH, 1, EMBED), jnp.float32),
        "qkv_w": nrm(ks[3], (DEPTH, EMBED, 3 * EMBED)),
        "qkv_b": jnp.zeros((DEPTH, 1, 3 * EMBED), jnp.float32),
        "proj_w": nrm(ks[4], (DEPTH, EMBED, EMBED)),
        "proj_b": jnp.zeros((DEPTH, 1, EMBED), jnp.float32),
        "ln2_g": jnp.ones((DEPTH, 1, EMBED), jnp.float32),
        "ln2_b": jnp.zeros((DEPTH, 1, EMBED), jnp.float32),
        "fc1_w": nrm(ks[5], (DEPTH, EMBED, hidden)),
        "fc1_b": jnp.zeros((DEPTH, 1, hidden), jnp.float32),
        "fc2_w": nrm(ks[6], (DEPTH, hidden, EMBED)),
        "fc2_b": jnp.zeros((DEPTH, 1, EMBED), jnp.float32),
        # final norm + classification head (self.vit.head -> Linear(dim, 12))
        "lnf_g": jnp.ones((1, EMBED), jnp.float32),
        "lnf_b": jnp.zeros((1, EMBED), jnp.float32),
        "head_w": nrm(ks[7], (EMBED, NUM_CLASSES)),
        "head_b": jnp.zeros((1, NUM_CLASSES), jnp.float32),
    }


# ------------------------- forward pass -------------------------
def vit_forward(x, params):
    # x: (B, C, H, W) NCHW, like the PyTorch module
    B, C, H, W = x.shape
    P = PATCH
    nH, nW = H // P, W // P
    nP = nH * nW
    cpp = C * P * P

    # patch extraction (conv k=P, s=P rewritten as matmul): one cheap XLA
    # reshape/transpose on the raw input, everything else lives in the kernel.
    patches = (x.reshape(B, C, nH, P, nW, P)
                 .transpose(0, 2, 4, 1, 3, 5)
                 .reshape(B, nP, cpp))

    prm = params
    # fuse patch-embed bias into the positional-embedding rows of the patch
    # tokens (row 0 = cls row keeps only pos[0]); tiny one-off param op.
    tok_bias = prm["pos_embed"].at[1:, :].add(prm["patch_b"][0])             # (T, E)
    # zero-pad the 12-class head to 128 lanes for an unmasked lane-dense store.
    head_w_pad = jnp.pad(prm["head_w"], ((0, 0), (0, HEAD_PAD - NUM_CLASSES)))
    head_b_pad = jnp.pad(prm["head_b"], ((0, 0), (0, HEAD_PAD - NUM_CLASSES)))

    def full_spec(arr):
        nd = arr.ndim
        # whole array resident in VMEM, same block every grid step (no re-DMA)
        return pl.BlockSpec(arr.shape, lambda b, _n=nd: (0,) * _n)

    weights = [
        prm["patch_w"], prm["cls_token"], tok_bias,
        prm["ln1_g"], prm["ln1_b"], prm["qkv_w"], prm["qkv_b"],
        prm["proj_w"], prm["proj_b"], prm["ln2_g"], prm["ln2_b"],
        prm["fc1_w"], prm["fc1_b"], prm["fc2_w"], prm["fc2_b"],
        prm["lnf_g"], prm["lnf_b"], head_w_pad, head_b_pad,
    ]

    in_specs = [pl.BlockSpec((1, nP, cpp), lambda b: (b, 0, 0))]
    in_specs += [full_spec(w) for w in weights]

    logits_pad = pl.pallas_call(
        _vit_kernel,
        grid=(B,),
        in_specs=in_specs,
        out_specs=pl.BlockSpec((1, 1, HEAD_PAD), lambda b: (b, 0, 0)),
        out_shape=jax.ShapeDtypeStruct((B, 1, HEAD_PAD), jnp.float32),
        compiler_params=pltpu.CompilerParams(
            dimension_semantics=("parallel",)),   # megacore: TCs split the batch
    )(patches, *weights)

    return logits_pad.reshape(B, HEAD_PAD)[:, :NUM_CLASSES]


# ------------------------- main -------------------------
if __name__ == "__main__":
    key = jax.random.PRNGKey(0)
    kx, kp = jax.random.split(key)
    x = jax.random.normal(kx, (2, IN_CHANS, IMG, IMG), dtype=jnp.float32)
    params = make_params(kp)

    logits = jax.jit(vit_forward)(x, params)
    logits = jax.block_until_ready(logits)
    assert logits.shape == (2, NUM_CLASSES)
    print("KERNEL_OK")
</pallas_src>

<mosaic_0001>
module attributes {stable_mosaic.version = 11 : i64} {
  func.func @_vit_kernel(%arg0: i32, %arg1: memref<1x4x768xf32, #tpu.memory_space<vmem>>, %arg2: memref<768x64xf32, #tpu.memory_space<vmem>>, %arg3: memref<1x64xf32, #tpu.memory_space<vmem>>, %arg4: memref<5x64xf32, #tpu.memory_space<vmem>>, %arg5: memref<2x1x64xf32, #tpu.memory_space<vmem>>, %arg6: memref<2x1x64xf32, #tpu.memory_space<vmem>>, %arg7: memref<2x64x192xf32, #tpu.memory_space<vmem>>, %arg8: memref<2x1x192xf32, #tpu.memory_space<vmem>>, %arg9: memref<2x64x64xf32, #tpu.memory_space<vmem>>, %arg10: memref<2x1x64xf32, #tpu.memory_space<vmem>>, %arg11: memref<2x1x64xf32, #tpu.memory_space<vmem>>, %arg12: memref<2x1x64xf32, #tpu.memory_space<vmem>>, %arg13: memref<2x64x256xf32, #tpu.memory_space<vmem>>, %arg14: memref<2x1x256xf32, #tpu.memory_space<vmem>>, %arg15: memref<2x256x64xf32, #tpu.memory_space<vmem>>, %arg16: memref<2x1x64xf32, #tpu.memory_space<vmem>>, %arg17: memref<1x64xf32, #tpu.memory_space<vmem>>, %arg18: memref<1x64xf32, #tpu.memory_space<vmem>>, %arg19: memref<64x128xf32, #tpu.memory_space<vmem>>, %arg20: memref<1x128xf32, #tpu.memory_space<vmem>>, %arg21: memref<1x1x128xf32, #tpu.memory_space<vmem>>) attributes {dimension_semantics = [#tpu.dimension_semantics<parallel>], iteration_bounds = array<i64: 2>, scalar_prefetch = 0 : i64, scratch_operands = 0 : i64, tpu.core_type = #tpu.core_type<tc>, window_params = [{transform_indices = @transform_0, window_bounds = array<i64: 1, 4, 768>}, {pipeline_mode = #tpu.pipeline_mode<synchronous>, transform_indices = @transform_1, window_bounds = array<i64: 768, 64>}, {pipeline_mode = #tpu.pipeline_mode<synchronous>, transform_indices = @transform_2, window_bounds = array<i64: 1, 64>}, {pipeline_mode = #tpu.pipeline_mode<synchronous>, transform_indices = @transform_3, window_bounds = array<i64: 5, 64>}, {pipeline_mode = #tpu.pipeline_mode<synchronous>, transform_indices = @transform_4, window_bounds = array<i64: 2, 1, 64>}, {pipeline_mode = #tpu.pipeline_mode<synchronous>, transform_indices = @transform_5, window_bounds = array<i64: 2, 1, 64>}, {pipeline_mode = #tpu.pipeline_mode<synchronous>, transform_indices = @transform_6, window_bounds = array<i64: 2, 64, 192>}, {pipeline_mode = #tpu.pipeline_mode<synchronous>, transform_indices = @transform_7, window_bounds = array<i64: 2, 1, 192>}, {pipeline_mode = #tpu.pipeline_mode<synchronous>, transform_indices = @transform_8, window_bounds = array<i64: 2, 64, 64>}, {pipeline_mode = #tpu.pipeline_mode<synchronous>, transform_indices = @transform_9, window_bounds = array<i64: 2, 1, 64>}, {pipeline_mode = #tpu.pipeline_mode<synchronous>, transform_indices = @transform_10, window_bounds = array<i64: 2, 1, 64>}, {pipeline_mode = #tpu.pipeline_mode<synchronous>, transform_indices = @transform_11, window_bounds = array<i64: 2, 1, 64>}, {pipeline_mode = #tpu.pipeline_mode<synchronous>, transform_indices = @transform_12, window_bounds = array<i64: 2, 64, 256>}, {pipeline_mode = #tpu.pipeline_mode<synchronous>, transform_indices = @transform_13, window_bounds = array<i64: 2, 1, 256>}, {pipeline_mode = #tpu.pipeline_mode<synchronous>, transform_indices = @transform_14, window_bounds = array<i64: 2, 256, 64>}, {pipeline_mode = #tpu.pipeline_mode<synchronous>, transform_indices = @transform_15, window_bounds = array<i64: 2, 1, 64>}, {pipeline_mode = #tpu.pipeline_mode<synchronous>, transform_indices = @transform_16, window_bounds = array<i64: 1, 64>}, {pipeline_mode = #tpu.pipeline_mode<synchronous>, transform_indices = @transform_17, window_bounds = array<i64: 1, 64>}, {pipeline_mode = #tpu.pipeline_mode<synchronous>, transform_indices = @transform_18, window_bounds = array<i64: 64, 128>}, {pipeline_mode = #tpu.pipeline_mode<synchronous>, transform_indices = @transform_19, window_bounds = array<i64: 1, 128>}, {transform_indices = @transform_20, window_bounds = array<i64: 1, 1, 128>}]} {
    %c0 = arith.constant 0 : index
    %c0_0 = arith.constant 0 : index
    %c0_1 = arith.constant 0 : index
    %0 = vector.load %arg1[%c0, %c0_0, %c0_1] : memref<1x4x768xf32, #tpu.memory_space<vmem>>, vector<1x4x768xf32>
    %1 = vector.shape_cast %0 : vector<1x4x768xf32> to vector<4x768xf32>
    %c0_2 = arith.constant 0 : index
    %c0_3 = arith.constant 0 : index
    %2 = vector.load %arg2[%c0_2, %c0_3] : memref<768x64xf32, #tpu.memory_space<vmem>>, vector<768x64xf32>
    %cst = arith.constant dense<0.000000e+00> : vector<4x64xf32>
    %3 = tpu.matmul %1, %2, %cst {dimension_numbers = #tpu.dot_dimension_numbers<[1], [0], [0], [1], [0, 0, 1, 1], [], []>} : vector<4x768xf32>, vector<768x64xf32>, vector<4x64xf32> -> vector<4x64xf32>
    %c0_4 = arith.constant 0 : index
    %c0_5 = arith.constant 0 : index
    %4 = vector.load %arg3[%c0_4, %c0_5] : memref<1x64xf32, #tpu.memory_space<vmem>>, vector<1x64xf32>
    %5 = tpu.concatenate %4, %3 in 0 : vector<1x64xf32>, vector<4x64xf32> -> vector<5x64xf32>
    %c0_6 = arith.constant 0 : index
    %c0_7 = arith.constant 0 : index
    %6 = vector.load %arg4[%c0_6, %c0_7] : memref<5x64xf32, #tpu.memory_space<vmem>>, vector<5x64xf32>
    %7 = arith.addf %5, %6 : vector<5x64xf32>
    %c0_8 = arith.constant 0 : index
    %c0_9 = arith.constant 0 : index
    %c0_10 = arith.constant 0 : index
    %8 = vector.load %arg5[%c0_8, %c0_9, %c0_10] : memref<2x1x64xf32, #tpu.memory_space<vmem>>, vector<1x1x64xf32>
    %9 = vector.shape_cast %8 : vector<1x1x64xf32> to vector<1x64xf32>
    %c0_11 = arith.constant 0 : index
    %c0_12 = arith.constant 0 : index
    %c0_13 = arith.constant 0 : index
    %10 = vector.load %arg6[%c0_11, %c0_12, %c0_13] : memref<2x1x64xf32, #tpu.memory_space<vmem>>, vector<1x1x64xf32>
    %11 = vector.shape_cast %10 : vector<1x1x64xf32> to vector<1x64xf32>
    %cst_14 = arith.constant dense<0.000000e+00> : vector<5xf32>
    %12 = vector.multi_reduction <add>, %7, %cst_14 [1] : vector<5x64xf32> to vector<5xf32>
    %13 = vector.shape_cast %12 : vector<5xf32> to vector<5x1xf32>
    %cst_15 = arith.constant 6.400000e+01 : f32
    %14 = vector.broadcast %cst_15 : f32 to vector<5x1xf32>
    %15 = arith.divf %13, %14 : vector<5x1xf32>
    %16 = vector.broadcast %15 : vector<5x1xf32> to vector<5x64xf32>
    %17 = arith.subf %7, %16 : vector<5x64xf32>
    %18 = arith.mulf %17, %17 : vector<5x64xf32>
    %cst_16 = arith.constant dense<0.000000e+00> : vector<5xf32>
    %19 = vector.multi_reduction <add>, %18, %cst_16 [1] : vector<5x64xf32> to vector<5xf32>
    %20 = vector.shape_cast %19 : vector<5xf32> to vector<5x1xf32>
    %cst_17 = arith.constant 6.400000e+01 : f32
    %21 = vector.broadcast %cst_17 : f32 to vector<5x1xf32>
    %22 = arith.divf %20, %21 : vector<5x1xf32>
    %23 = vector.broadcast %15 : vector<5x1xf32> to vector<5x64xf32>
    %24 = arith.subf %7, %23 : vector<5x64xf32>
    %cst_18 = arith.constant 9.99999997E-7 : f32
    %25 = vector.broadcast %cst_18 : f32 to vector<5x1xf32>
    %26 = arith.addf %22, %25 : vector<5x1xf32>
    %27 = math.rsqrt %26 : vector<5x1xf32>
    %28 = vector.broadcast %27 : vector<5x1xf32> to vector<5x64xf32>
    %29 = arith.mulf %24, %28 : vector<5x64xf32>
    %30 = vector.broadcast %9 : vector<1x64xf32> to vector<5x64xf32>
    %31 = arith.mulf %29, %30 : vector<5x64xf32>
    %32 = vector.broadcast %11 : vector<1x64xf32> to vector<5x64xf32>
    %33 = arith.addf %31, %32 : vector<5x64xf32>
    %c0_19 = arith.constant 0 : index
    %c0_20 = arith.constant 0 : index
    %c0_21 = arith.constant 0 : index
    %34 = vector.load %arg7[%c0_19, %c0_20, %c0_21] : memref<2x64x192xf32, #tpu.memory_space<vmem>>, vector<1x64x192xf32>
    %35 = vector.shape_cast %34 : vector<1x64x192xf32> to vector<64x192xf32>
    %cst_22 = arith.constant dense<0.000000e+00> : vector<5x192xf32>
    %36 = tpu.matmul %33, %35, %cst_22 {dimension_numbers = #tpu.dot_dimension_numbers<[1], [0], [0], [1], [0, 0, 1, 1], [], []>} : vector<5x64xf32>, vector<64x192xf32>, vector<5x192xf32> -> vector<5x192xf32>
    %c0_23 = arith.constant 0 : index
    %c0_24 = arith.constant 0 : index
    %c0_25 = arith.constant 0 : index
    %37 = vector.load %arg8[%c0_23, %c0_24, %c0_25] : memref<2x1x192xf32, #tpu.memory_space<vmem>>, vector<1x1x192xf32>
    %38 = vector.shape_cast %37 : vector<1x1x192xf32> to vector<1x192xf32>
    %39 = vector.broadcast %38 : vector<1x192xf32> to vector<5x192xf32>
    %40 = arith.addf %36, %39 : vector<5x192xf32>
    %41 = vector.extract_strided_slice %40 {offsets = [0, 0], sizes = [5, 16], strides = [1, 1]} : vector<5x192xf32> to vector<5x16xf32>
    %42 = vector.extract_strided_slice %40 {offsets = [0, 64], sizes = [5, 16], strides = [1, 1]} : vector<5x192xf32> to vector<5x16xf32>
    %43 = vector.extract_strided_slice %40 {offsets = [0, 128], sizes = [5, 16], strides = [1, 1]} : vector<5x192xf32> to vector<5x16xf32>
    %cst_26 = arith.constant dense<0.000000e+00> : vector<5x5xf32>
    %44 = tpu.matmul %41, %42, %cst_26 {dimension_numbers = #tpu.dot_dimension_numbers<[1], [1], [0], [0], [0, 0, 1, 0], [], []>} : vector<5x16xf32>, vector<5x16xf32>, vector<5x5xf32> -> vector<5x5xf32>
    %cst_27 = arith.constant 2.500000e-01 : f32
    %45 = vector.broadcast %cst_27 : f32 to vector<5x5xf32>
    %46 = arith.mulf %44, %45 : vector<5x5xf32>
    %cst_28 = arith.constant dense<0xFF800000> : vector<5xf32>
    %47 = vector.multi_reduction <maximumf>, %46, %cst_28 [1] : vector<5x5xf32> to vector<5xf32>
    %48 = vector.shape_cast %47 : vector<5xf32> to vector<5x1xf32>
    %49 = vector.broadcast %48 : vector<5x1xf32> to vector<5x5xf32>
    %50 = arith.subf %46, %49 : vector<5x5xf32>
    %51 = math.exp %50 : vector<5x5xf32>
    %cst_29 = arith.constant dense<0.000000e+00> : vector<5xf32>
    %52 = vector.multi_reduction <add>, %51, %cst_29 [1] : vector<5x5xf32> to vector<5xf32>
    %53 = vector.shape_cast %52 : vector<5xf32> to vector<5x1xf32>
    %54 = tpu.reciprocal %53 : vector<5x1xf32> -> vector<5x1xf32>
    %55 = vector.broadcast %54 : vector<5x1xf32> to vector<5x5xf32>
    %56 = arith.mulf %51, %55 : vector<5x5xf32>
    %cst_30 = arith.constant dense<0.000000e+00> : vector<5x16xf32>
    %57 = tpu.matmul %56, %43, %cst_30 {dimension_numbers = #tpu.dot_dimension_numbers<[1], [0], [0], [1], [0, 0, 1, 1], [], []>} : vector<5x5xf32>, vector<5x16xf32>, vector<5x16xf32> -> vector<5x16xf32>
    %58 = vector.extract_strided_slice %40 {offsets = [0, 16], sizes = [5, 16], strides = [1, 1]} : vector<5x192xf32> to vector<5x16xf32>
    %59 = vector.extract_strided_slice %40 {offsets = [0, 80], sizes = [5, 16], strides = [1, 1]} : vector<5x192xf32> to vector<5x16xf32>
    %60 = vector.extract_strided_slice %40 {offsets = [0, 144], sizes = [5, 16], strides = [1, 1]} : vector<5x192xf32> to vector<5x16xf32>
    %cst_31 = arith.constant dense<0.000000e+00> : vector<5x5xf32>
    %61 = tpu.matmul %58, %59, %cst_31 {dimension_numbers = #tpu.dot_dimension_numbers<[1], [1], [0], [0], [0, 0, 1, 0], [], []>} : vector<5x16xf32>, vector<5x16xf32>, vector<5x5xf32> -> vector<5x5xf32>
    %cst_32 = arith.constant 2.500000e-01 : f32
    %62 = vector.broadcast %cst_32 : f32 to vector<5x5xf32>
    %63 = arith.mulf %61, %62 : vector<5x5xf32>
    %cst_33 = arith.constant dense<0xFF800000> : vector<5xf32>
    %64 = vector.multi_reduction <maximumf>, %63, %cst_33 [1] : vector<5x5xf32> to vector<5xf32>
    %65 = vector.shape_cast %64 : vector<5xf32> to vector<5x1xf32>
    %66 = vector.broadcast %65 : vector<5x1xf32> to vector<5x5xf32>
    %67 = arith.subf %63, %66 : vector<5x5xf32>
    %68 = math.exp %67 : vector<5x5xf32>
    %cst_34 = arith.constant dense<0.000000e+00> : vector<5xf32>
    %69 = vector.multi_reduction <add>, %68, %cst_34 [1] : vector<5x5xf32> to vector<5xf32>
    %70 = vector.shape_cast %69 : vector<5xf32> to vector<5x1xf32>
    %71 = tpu.reciprocal %70 : vector<5x1xf32> -> vector<5x1xf32>
    %72 = vector.broadcast %71 : vector<5x1xf32> to vector<5x5xf32>
    %73 = arith.mulf %68, %72 : vector<5x5xf32>
    %cst_35 = arith.constant dense<0.000000e+00> : vector<5x16xf32>
    %74 = tpu.matmul %73, %60, %cst_35 {dimension_numbers = #tpu.dot_dimension_numbers<[1], [0], [0], [1], [0, 0, 1, 1], [], []>} : vector<5x5xf32>, vector<5x16xf32>, vector<5x16xf32> -> vector<5x16xf32>
    %75 = vector.extract_strided_slice %40 {offsets = [0, 32], sizes = [5, 16], strides = [1, 1]} : vector<5x192xf32> to vector<5x16xf32>
    %76 = vector.extract_strided_slice %40 {offsets = [0, 96], sizes = [5, 16], strides = [1, 1]} : vector<5x192xf32> to vector<5x16xf32>
    %77 = vector.extract_strided_slice %40 {offsets = [0, 160], sizes = [5, 16], strides = [1, 1]} : vector<5x192xf32> to vector<5x16xf32>
    %cst_36 = arith.constant dense<0.000000e+00> : vector<5x5xf32>
    %78 = tpu.matmul %75, %76, %cst_36 {dimension_numbers = #tpu.dot_dimension_numbers<[1], [1], [0], [0], [0, 0, 1, 0], [], []>} : vector<5x16xf32>, vector<5x16xf32>, vector<5x5xf32> -> vector<5x5xf32>
    %cst_37 = arith.constant 2.500000e-01 : f32
    %79 = vector.broadcast %cst_37 : f32 to vector<5x5xf32>
    %80 = arith.mulf %78, %79 : vector<5x5xf32>
    %cst_38 = arith.constant dense<0xFF800000> : vector<5xf32>
    %81 = vector.multi_reduction <maximumf>, %80, %cst_38 [1] : vector<5x5xf32> to vector<5xf32>
    %82 = vector.shape_cast %81 : vector<5xf32> to vector<5x1xf32>
    %83 = vector.broadcast %82 : vector<5x1xf32> to vector<5x5xf32>
    %84 = arith.subf %80, %83 : vector<5x5xf32>
    %85 = math.exp %84 : vector<5x5xf32>
    %cst_39 = arith.constant dense<0.000000e+00> : vector<5xf32>
    %86 = vector.multi_reduction <add>, %85, %cst_39 [1] : vector<5x5xf32> to vector<5xf32>
    %87 = vector.shape_cast %86 : vector<5xf32> to vector<5x1xf32>
    %88 = tpu.reciprocal %87 : vector<5x1xf32> -> vector<5x1xf32>
    %89 = vector.broadcast %88 : vector<5x1xf32> to vector<5x5xf32>
    %90 = arith.mulf %85, %89 : vector<5x5xf32>
    %cst_40 = arith.constant dense<0.000000e+00> : vector<5x16xf32>
    %91 = tpu.matmul %90, %77, %cst_40 {dimension_numbers = #tpu.dot_dimension_numbers<[1], [0], [0], [1], [0, 0, 1, 1], [], []>} : vector<5x5xf32>, vector<5x16xf32>, vector<5x16xf32> -> vector<5x16xf32>
    %92 = vector.extract_strided_slice %40 {offsets = [0, 48], sizes = [5, 16], strides = [1, 1]} : vector<5x192xf32> to vector<5x16xf32>
    %93 = vector.extract_strided_slice %40 {offsets = [0, 112], sizes = [5, 16], strides = [1, 1]} : vector<5x192xf32> to vector<5x16xf32>
    %94 = vector.extract_strided_slice %40 {offsets = [0, 176], sizes = [5, 16], strides = [1, 1]} : vector<5x192xf32> to vector<5x16xf32>
    %cst_41 = arith.constant dense<0.000000e+00> : vector<5x5xf32>
    %95 = tpu.matmul %92, %93, %cst_41 {dimension_numbers = #tpu.dot_dimension_numbers<[1], [1], [0], [0], [0, 0, 1, 0], [], []>} : vector<5x16xf32>, vector<5x16xf32>, vector<5x5xf32> -> vector<5x5xf32>
    %cst_42 = arith.constant 2.500000e-01 : f32
    %96 = vector.broadcast %cst_42 : f32 to vector<5x5xf32>
    %97 = arith.mulf %95, %96 : vector<5x5xf32>
    %cst_43 = arith.constant dense<0xFF800000> : vector<5xf32>
    %98 = vector.multi_reduction <maximumf>, %97, %cst_43 [1] : vector<5x5xf32> to vector<5xf32>
    %99 = vector.shape_cast %98 : vector<5xf32> to vector<5x1xf32>
    %100 = vector.broadcast %99 : vector<5x1xf32> to vector<5x5xf32>
    %101 = arith.subf %97, %100 : vector<5x5xf32>
    %102 = math.exp %101 : vector<5x5xf32>
    %cst_44 = arith.constant dense<0.000000e+00> : vector<5xf32>
    %103 = vector.multi_reduction <add>, %102, %cst_44 [1] : vector<5x5xf32> to vector<5xf32>
    %104 = vector.shape_cast %103 : vector<5xf32> to vector<5x1xf32>
    %105 = tpu.reciprocal %104 : vector<5x1xf32> -> vector<5x1xf32>
    %106 = vector.broadcast %105 : vector<5x1xf32> to vector<5x5xf32>
    %107 = arith.mulf %102, %106 : vector<5x5xf32>
    %cst_45 = arith.constant dense<0.000000e+00> : vector<5x16xf32>
    %108 = tpu.matmul %107, %94, %cst_45 {dimension_numbers = #tpu.dot_dimension_numbers<[1], [0], [0], [1], [0, 0, 1, 1], [], []>} : vector<5x5xf32>, vector<5x16xf32>, vector<5x16xf32> -> vector<5x16xf32>
    %109 = tpu.concatenate %57, %74, %91, %108 in 1 : vector<5x16xf32>, vector<5x16xf32>, vector<5x16xf32>, vector<5x16xf32> -> vector<5x64xf32>
    %c0_46 = arith.constant 0 : index
    %c0_47 = arith.constant 0 : index
    %c0_48 = arith.constant 0 : index
    %110 = vector.load %arg9[%c0_46, %c0_47, %c0_48] : memref<2x64x64xf32, #tpu.memory_space<vmem>>, vector<1x64x64xf32>
    %111 = vector.shape_cast %110 : vector<1x64x64xf32> to vector<64x64xf32>
    %cst_49 = arith.constant dense<0.000000e+00> : vector<5x64xf32>
    %112 = tpu.matmul %109, %111, %cst_49 {dimension_numbers = #tpu.dot_dimension_numbers<[1], [0], [0], [1], [0, 0, 1, 1], [], []>} : vector<5x64xf32>, vector<64x64xf32>, vector<5x64xf32> -> vector<5x64xf32>
    %c0_50 = arith.constant 0 : index
    %c0_51 = arith.constant 0 : index
    %c0_52 = arith.constant 0 : index
    %113 = vector.load %arg10[%c0_50, %c0_51, %c0_52] : memref<2x1x64xf32, #tpu.memory_space<vmem>>, vector<1x1x64xf32>
    %114 = vector.shape_cast %113 : vector<1x1x64xf32> to vector<1x64xf32>
    %115 = vector.broadcast %114 : vector<1x64xf32> to vector<5x64xf32>
    %116 = arith.addf %112, %115 : vector<5x64xf32>
    %117 = arith.addf %7, %116 : vector<5x64xf32>
    %c0_53 = arith.constant 0 : index
    %c0_54 = arith.constant 0 : index
    %c0_55 = arith.constant 0 : index
    %118 = vector.load %arg11[%c0_53, %c0_54, %c0_55] : memref<2x1x64xf32, #tpu.memory_space<vmem>>, vector<1x1x64xf32>
    %119 = vector.shape_cast %118 : vector<1x1x64xf32> to vector<1x64xf32>
    %c0_56 = arith.constant 0 : index
    %c0_57 = arith.constant 0 : index
    %c0_58 = arith.constant 0 : index
    %120 = vector.load %arg12[%c0_56, %c0_57, %c0_58] : memref<2x1x64xf32, #tpu.memory_space<vmem>>, vector<1x1x64xf32>
    %121 = vector.shape_cast %120 : vector<1x1x64xf32> to vector<1x64xf32>
    %cst_59 = arith.constant dense<0.000000e+00> : vector<5xf32>
    %122 = vector.multi_reduction <add>, %117, %cst_59 [1] : vector<5x64xf32> to vector<5xf32>
    %123 = vector.shape_cast %122 : vector<5xf32> to vector<5x1xf32>
    %cst_60 = arith.constant 6.400000e+01 : f32
    %124 = vector.broadcast %cst_60 : f32 to vector<5x1xf32>
    %125 = arith.divf %123, %124 : vector<5x1xf32>
    %126 = vector.broadcast %125 : vector<5x1xf32> to vector<5x64xf32>
    %127 = arith.subf %117, %126 : vector<5x64xf32>
    %128 = arith.mulf %127, %127 : vector<5x64xf32>
    %cst_61 = arith.constant dense<0.000000e+00> : vector<5xf32>
    %129 = vector.multi_reduction <add>, %128, %cst_61 [1] : vector<5x64xf32> to vector<5xf32>
    %130 = vector.shape_cast %129 : vector<5xf32> to vector<5x1xf32>
    %cst_62 = arith.constant 6.400000e+01 : f32
    %131 = vector.broadcast %cst_62 : f32 to vector<5x1xf32>
    %132 = arith.divf %130, %131 : vector<5x1xf32>
    %133 = vector.broadcast %125 : vector<5x1xf32> to vector<5x64xf32>
    %134 = arith.subf %117, %133 : vector<5x64xf32>
    %cst_63 = arith.constant 9.99999997E-7 : f32
    %135 = vector.broadcast %cst_63 : f32 to vector<5x1xf32>
    %136 = arith.addf %132, %135 : vector<5x1xf32>
    %137 = math.rsqrt %136 : vector<5x1xf32>
    %138 = vector.broadcast %137 : vector<5x1xf32> to vector<5x64xf32>
    %139 = arith.mulf %134, %138 : vector<5x64xf32>
    %140 = vector.broadcast %119 : vector<1x64xf32> to vector<5x64xf32>
    %141 = arith.mulf %139, %140 : vector<5x64xf32>
    %142 = vector.broadcast %121 : vector<1x64xf32> to vector<5x64xf32>
    %143 = arith.addf %141, %142 : vector<5x64xf32>
    %c0_64 = arith.constant 0 : index
    %c0_65 = arith.constant 0 : index
    %c0_66 = arith.constant 0 : index
    %144 = vector.load %arg13[%c0_64, %c0_65, %c0_66] : memref<2x64x256xf32, #tpu.memory_space<vmem>>, vector<1x64x256xf32>
    %145 = vector.shape_cast %144 : vector<1x64x256xf32> to vector<64x256xf32>
    %cst_67 = arith.constant dense<0.000000e+00> : vector<5x256xf32>
    %146 = tpu.matmul %143, %145, %cst_67 {dimension_numbers = #tpu.dot_dimension_numbers<[1], [0], [0], [1], [0, 0, 1, 1], [], []>} : vector<5x64xf32>, vector<64x256xf32>, vector<5x256xf32> -> vector<5x256xf32>
    %c0_68 = arith.constant 0 : index
    %c0_69 = arith.constant 0 : index
    %c0_70 = arith.constant 0 : index
    %147 = vector.load %arg14[%c0_68, %c0_69, %c0_70] : memref<2x1x256xf32, #tpu.memory_space<vmem>>, vector<1x1x256xf32>
    %148 = vector.shape_cast %147 : vector<1x1x256xf32> to vector<1x256xf32>
    %149 = vector.broadcast %148 : vector<1x256xf32> to vector<5x256xf32>
    %150 = arith.addf %146, %149 : vector<5x256xf32>
    %cst_71 = arith.constant 5.000000e-01 : f32
    %151 = vector.broadcast %cst_71 : f32 to vector<5x256xf32>
    %152 = arith.mulf %151, %150 : vector<5x256xf32>
    %cst_72 = arith.constant 0.707106769 : f32
    %153 = vector.broadcast %cst_72 : f32 to vector<5x256xf32>
    %154 = arith.mulf %150, %153 : vector<5x256xf32>
    %155 = math.erf %154 : vector<5x256xf32>
    %cst_73 = arith.constant 1.000000e+00 : f32
    %156 = vector.broadcast %cst_73 : f32 to vector<5x256xf32>
    %157 = arith.addf %156, %155 : vector<5x256xf32>
    %158 = arith.mulf %152, %157 : vector<5x256xf32>
    %c0_74 = arith.constant 0 : index
    %c0_75 = arith.constant 0 : index
    %c0_76 = arith.constant 0 : index
    %159 = vector.load %arg15[%c0_74, %c0_75, %c0_76] : memref<2x256x64xf32, #tpu.memory_space<vmem>>, vector<1x256x64xf32>
    %160 = vector.shape_cast %159 : vector<1x256x64xf32> to vector<256x64xf32>
    %cst_77 = arith.constant dense<0.000000e+00> : vector<5x64xf32>
    %161 = tpu.matmul %158, %160, %cst_77 {dimension_numbers = #tpu.dot_dimension_numbers<[1], [0], [0], [1], [0, 0, 1, 1], [], []>} : vector<5x256xf32>, vector<256x64xf32>, vector<5x64xf32> -> vector<5x64xf32>
    %162 = arith.addf %117, %161 : vector<5x64xf32>
    %c0_78 = arith.constant 0 : index
    %c0_79 = arith.constant 0 : index
    %c0_80 = arith.constant 0 : index
    %163 = vector.load %arg16[%c0_78, %c0_79, %c0_80] : memref<2x1x64xf32, #tpu.memory_space<vmem>>, vector<1x1x64xf32>
    %164 = vector.shape_cast %163 : vector<1x1x64xf32> to vector<1x64xf32>
    %165 = vector.broadcast %164 : vector<1x64xf32> to vector<5x64xf32>
    %166 = arith.addf %162, %165 : vector<5x64xf32>
    %c1 = arith.constant 1 : index
    %c0_81 = arith.constant 0 : index
    %c0_82 = arith.constant 0 : index
    %167 = vector.load %arg5[%c1, %c0_81, %c0_82] : memref<2x1x64xf32, #tpu.memory_space<vmem>>, vector<1x1x64xf32>
    %168 = vector.shape_cast %167 : vector<1x1x64xf32> to vector<1x64xf32>
    %c1_83 = arith.constant 1 : index
    %c0_84 = arith.constant 0 : index
    %c0_85 = arith.constant 0 : index
    %169 = vector.load %arg6[%c1_83, %c0_84, %c0_85] : memref<2x1x64xf32, #tpu.memory_space<vmem>>, vector<1x1x64xf32>
    %170 = vector.shape_cast %169 : vector<1x1x64xf32> to vector<1x64xf32>
    %cst_86 = arith.constant dense<0.000000e+00> : vector<5xf32>
    %171 = vector.multi_reduction <add>, %166, %cst_86 [1] : vector<5x64xf32> to vector<5xf32>
    %172 = vector.shape_cast %171 : vector<5xf32> to vector<5x1xf32>
    %cst_87 = arith.constant 6.400000e+01 : f32
    %173 = vector.broadcast %cst_87 : f32 to vector<5x1xf32>
    %174 = arith.divf %172, %173 : vector<5x1xf32>
    %175 = vector.broadcast %174 : vector<5x1xf32> to vector<5x64xf32>
    %176 = arith.subf %166, %175 : vector<5x64xf32>
    %177 = arith.mulf %176, %176 : vector<5x64xf32>
    %cst_88 = arith.constant dense<0.000000e+00> : vector<5xf32>
    %178 = vector.multi_reduction <add>, %177, %cst_88 [1] : vector<5x64xf32> to vector<5xf32>
    %179 = vector.shape_cast %178 : vector<5xf32> to vector<5x1xf32>
    %cst_89 = arith.constant 6.400000e+01 : f32
    %180 = vector.broadcast %cst_89 : f32 to vector<5x1xf32>
    %181 = arith.divf %179, %180 : vector<5x1xf32>
    %182 = vector.broadcast %174 : vector<5x1xf32> to vector<5x64xf32>
    %183 = arith.subf %166, %182 : vector<5x64xf32>
    %cst_90 = arith.constant 9.99999997E-7 : f32
    %184 = vector.broadcast %cst_90 : f32 to vector<5x1xf32>
    %185 = arith.addf %181, %184 : vector<5x1xf32>
    %186 = math.rsqrt %185 : vector<5x1xf32>
    %187 = vector.broadcast %186 : vector<5x1xf32> to vector<5x64xf32>
    %188 = arith.mulf %183, %187 : vector<5x64xf32>
    %189 = vector.broadcast %168 : vector<1x64xf32> to vector<5x64xf32>
    %190 = arith.mulf %188, %189 : vector<5x64xf32>
    %191 = vector.broadcast %170 : vector<1x64xf32> to vector<5x64xf32>
    %192 = arith.addf %190, %191 : vector<5x64xf32>
    %c1_91 = arith.constant 1 : index
    %c0_92 = arith.constant 0 : index
    %c0_93 = arith.constant 0 : index
    %193 = vector.load %arg7[%c1_91, %c0_92, %c0_93] : memref<2x64x192xf32, #tpu.memory_space<vmem>>, vector<1x64x192xf32>
    %194 = vector.shape_cast %193 : vector<1x64x192xf32> to vector<64x192xf32>
    %cst_94 = arith.constant dense<0.000000e+00> : vector<5x192xf32>
    %195 = tpu.matmul %192, %194, %cst_94 {dimension_numbers = #tpu.dot_dimension_numbers<[1], [0], [0], [1], [0, 0, 1, 1], [], []>} : vector<5x64xf32>, vector<64x192xf32>, vector<5x192xf32> -> vector<5x192xf32>
    %c1_95 = arith.constant 1 : index
    %c0_96 = arith.constant 0 : index
    %c0_97 = arith.constant 0 : index
    %196 = vector.load %arg8[%c1_95, %c0_96, %c0_97] : memref<2x1x192xf32, #tpu.memory_space<vmem>>, vector<1x1x192xf32>
    %197 = vector.shape_cast %196 : vector<1x1x192xf32> to vector<1x192xf32>
    %198 = vector.broadcast %197 : vector<1x192xf32> to vector<5x192xf32>
    %199 = arith.addf %195, %198 : vector<5x192xf32>
    %200 = vector.extract_strided_slice %199 {offsets = [0, 0], sizes = [5, 16], strides = [1, 1]} : vector<5x192xf32> to vector<5x16xf32>
    %201 = vector.extract_strided_slice %199 {offsets = [0, 64], sizes = [5, 16], strides = [1, 1]} : vector<5x192xf32> to vector<5x16xf32>
    %202 = vector.extract_strided_slice %199 {offsets = [0, 128], sizes = [5, 16], strides = [1, 1]} : vector<5x192xf32> to vector<5x16xf32>
    %cst_98 = arith.constant dense<0.000000e+00> : vector<5x5xf32>
    %203 = tpu.matmul %200, %201, %cst_98 {dimension_numbers = #tpu.dot_dimension_numbers<[1], [1], [0], [0], [0, 0, 1, 0], [], []>} : vector<5x16xf32>, vector<5x16xf32>, vector<5x5xf32> -> vector<5x5xf32>
    %cst_99 = arith.constant 2.500000e-01 : f32
    %204 = vector.broadcast %cst_99 : f32 to vector<5x5xf32>
    %205 = arith.mulf %203, %204 : vector<5x5xf32>
    %cst_100 = arith.constant dense<0xFF800000> : vector<5xf32>
    %206 = vector.multi_reduction <maximumf>, %205, %cst_100 [1] : vector<5x5xf32> to vector<5xf32>
    %207 = vector.shape_cast %206 : vector<5xf32> to vector<5x1xf32>
    %208 = vector.broadcast %207 : vector<5x1xf32> to vector<5x5xf32>
    %209 = arith.subf %205, %208 : vector<5x5xf32>
    %210 = math.exp %209 : vector<5x5xf32>
    %cst_101 = arith.constant dense<0.000000e+00> : vector<5xf32>
    %211 = vector.multi_reduction <add>, %210, %cst_101 [1] : vector<5x5xf32> to vector<5xf32>
    %212 = vector.shape_cast %211 : vector<5xf32> to vector<5x1xf32>
    %213 = tpu.reciprocal %212 : vector<5x1xf32> -> vector<5x1xf32>
    %214 = vector.broadcast %213 : vector<5x1xf32> to vector<5x5xf32>
    %215 = arith.mulf %210, %214 : vector<5x5xf32>
    %cst_102 = arith.constant dense<0.000000e+00> : vector<5x16xf32>
    %216 = tpu.matmul %215, %202, %cst_102 {dimension_numbers = #tpu.dot_dimension_numbers<[1], [0], [0], [1], [0, 0, 1, 1], [], []>} : vector<5x5xf32>, vector<5x16xf32>, vector<5x16xf32> -> vector<5x16xf32>
    %217 = vector.extract_strided_slice %199 {offsets = [0, 16], sizes = [5, 16], strides = [1, 1]} : vector<5x192xf32> to vector<5x16xf32>
    %218 = vector.extract_strided_slice %199 {offsets = [0, 80], sizes = [5, 16], strides = [1, 1]} : vector<5x192xf32> to vector<5x16xf32>
    %219 = vector.extract_strided_slice %199 {offsets = [0, 144], sizes = [5, 16], strides = [1, 1]} : vector<5x192xf32> to vector<5x16xf32>
    %cst_103 = arith.constant dense<0.000000e+00> : vector<5x5xf32>
    %220 = tpu.matmul %217, %218, %cst_103 {dimension_numbers = #tpu.dot_dimension_numbers<[1], [1], [0], [0], [0, 0, 1, 0], [], []>} : vector<5x16xf32>, vector<5x16xf32>, vector<5x5xf32> -> vector<5x5xf32>
    %cst_104 = arith.constant 2.500000e-01 : f32
    %221 = vector.broadcast %cst_104 : f32 to vector<5x5xf32>
    %222 = arith.mulf %220, %221 : vector<5x5xf32>
    %cst_105 = arith.constant dense<0xFF800000> : vector<5xf32>
    %223 = vector.multi_reduction <maximumf>, %222, %cst_105 [1] : vector<5x5xf32> to vector<5xf32>
    %224 = vector.shape_cast %223 : vector<5xf32> to vector<5x1xf32>
    %225 = vector.broadcast %224 : vector<5x1xf32> to vector<5x5xf32>
    %226 = arith.subf %222, %225 : vector<5x5xf32>
    %227 = math.exp %226 : vector<5x5xf32>
    %cst_106 = arith.constant dense<0.000000e+00> : vector<5xf32>
    %228 = vector.multi_reduction <add>, %227, %cst_106 [1] : vector<5x5xf32> to vector<5xf32>
    %229 = vector.shape_cast %228 : vector<5xf32> to vector<5x1xf32>
    %230 = tpu.reciprocal %229 : vector<5x1xf32> -> vector<5x1xf32>
    %231 = vector.broadcast %230 : vector<5x1xf32> to vector<5x5xf32>
    %232 = arith.mulf %227, %231 : vector<5x5xf32>
    %cst_107 = arith.constant dense<0.000000e+00> : vector<5x16xf32>
    %233 = tpu.matmul %232, %219, %cst_107 {dimension_numbers = #tpu.dot_dimension_numbers<[1], [0], [0], [1], [0, 0, 1, 1], [], []>} : vector<5x5xf32>, vector<5x16xf32>, vector<5x16xf32> -> vector<5x16xf32>
    %234 = vector.extract_strided_slice %199 {offsets = [0, 32], sizes = [5, 16], strides = [1, 1]} : vector<5x192xf32> to vector<5x16xf32>
    %235 = vector.extract_strided_slice %199 {offsets = [0, 96], sizes = [5, 16], strides = [1, 1]} : vector<5x192xf32> to vector<5x16xf32>
    %236 = vector.extract_strided_slice %199 {offsets = [0, 160], sizes = [5, 16], strides = [1, 1]} : vector<5x192xf32> to vector<5x16xf32>
    %cst_108 = arith.constant dense<0.000000e+00> : vector<5x5xf32>
    %237 = tpu.matmul %234, %235, %cst_108 {dimension_numbers = #tpu.dot_dimension_numbers<[1], [1], [0], [0], [0, 0, 1, 0], [], []>} : vector<5x16xf32>, vector<5x16xf32>, vector<5x5xf32> -> vector<5x5xf32>
    %cst_109 = arith.constant 2.500000e-01 : f32
    %238 = vector.broadcast %cst_109 : f32 to vector<5x5xf32>
    %239 = arith.mulf %237, %238 : vector<5x5xf32>
    %cst_110 = arith.constant dense<0xFF800000> : vector<5xf32>
    %240 = vector.multi_reduction <maximumf>, %239, %cst_110 [1] : vector<5x5xf32> to vector<5xf32>
    %241 = vector.shape_cast %240 : vector<5xf32> to vector<5x1xf32>
    %242 = vector.broadcast %241 : vector<5x1xf32> to vector<5x5xf32>
    %243 = arith.subf %239, %242 : vector<5x5xf32>
    %244 = math.exp %243 : vector<5x5xf32>
    %cst_111 = arith.constant dense<0.000000e+00> : vector<5xf32>
    %245 = vector.multi_reduction <add>, %244, %cst_111 [1] : vector<5x5xf32> to vector<5xf32>
    %246 = vector.shape_cast %245 : vector<5xf32> to vector<5x1xf32>
    %247 = tpu.reciprocal %246 : vector<5x1xf32> -> vector<5x1xf32>
    %248 = vector.broadcast %247 : vector<5x1xf32> to vector<5x5xf32>
    %249 = arith.mulf %244, %248 : vector<5x5xf32>
    %cst_112 = arith.constant dense<0.000000e+00> : vector<5x16xf32>
    %250 = tpu.matmul %249, %236, %cst_112 {dimension_numbers = #tpu.dot_dimension_numbers<[1], [0], [0], [1], [0, 0, 1, 1], [], []>} : vector<5x5xf32>, vector<5x16xf32>, vector<5x16xf32> -> vector<5x16xf32>
    %251 = vector.extract_strided_slice %199 {offsets = [0, 48], sizes = [5, 16], strides = [1, 1]} : vector<5x192xf32> to vector<5x16xf32>
    %252 = vector.extract_strided_slice %199 {offsets = [0, 112], sizes = [5, 16], strides = [1, 1]} : vector<5x192xf32> to vector<5x16xf32>
    %253 = vector.extract_strided_slice %199 {offsets = [0, 176], sizes = [5, 16], strides = [1, 1]} : vector<5x192xf32> to vector<5x16xf32>
    %cst_113 = arith.constant dense<0.000000e+00> : vector<5x5xf32>
    %254 = tpu.matmul %251, %252, %cst_113 {dimension_numbers = #tpu.dot_dimension_numbers<[1], [1], [0], [0], [0, 0, 1, 0], [], []>} : vector<5x16xf32>, vector<5x16xf32>, vector<5x5xf32> -> vector<5x5xf32>
    %cst_114 = arith.constant 2.500000e-01 : f32
    %255 = vector.broadcast %cst_114 : f32 to vector<5x5xf32>
    %256 = arith.mulf %254, %255 : vector<5x5xf32>
    %cst_115 = arith.constant dense<0xFF800000> : vector<5xf32>
    %257 = vector.multi_reduction <maximumf>, %256, %cst_115 [1] : vector<5x5xf32> to vector<5xf32>
    %258 = vector.shape_cast %257 : vector<5xf32> to vector<5x1xf32>
    %259 = vector.broadcast %258 : vector<5x1xf32> to vector<5x5xf32>
    %260 = arith.subf %256, %259 : vector<5x5xf32>
    %261 = math.exp %260 : vector<5x5xf32>
    %cst_116 = arith.constant dense<0.000000e+00> : vector<5xf32>
    %262 = vector.multi_reduction <add>, %261, %cst_116 [1] : vector<5x5xf32> to vector<5xf32>
    %263 = vector.shape_cast %262 : vector<5xf32> to vector<5x1xf32>
    %264 = tpu.reciprocal %263 : vector<5x1xf32> -> vector<5x1xf32>
    %265 = vector.broadcast %264 : vector<5x1xf32> to vector<5x5xf32>
    %266 = arith.mulf %261, %265 : vector<5x5xf32>
    %cst_117 = arith.constant dense<0.000000e+00> : vector<5x16xf32>
    %267 = tpu.matmul %266, %253, %cst_117 {dimension_numbers = #tpu.dot_dimension_numbers<[1], [0], [0], [1], [0, 0, 1, 1], [], []>} : vector<5x5xf32>, vector<5x16xf32>, vector<5x16xf32> -> vector<5x16xf32>
    %268 = tpu.concatenate %216, %233, %250, %267 in 1 : vector<5x16xf32>, vector<5x16xf32>, vector<5x16xf32>, vector<5x16xf32> -> vector<5x64xf32>
    %c1_118 = arith.constant 1 : index
    %c0_119 = arith.constant 0 : index
    %c0_120 = arith.constant 0 : index
    %269 = vector.load %arg9[%c1_118, %c0_119, %c0_120] : memref<2x64x64xf32, #tpu.memory_space<vmem>>, vector<1x64x64xf32>
    %270 = vector.shape_cast %269 : vector<1x64x64xf32> to vector<64x64xf32>
    %cst_121 = arith.constant dense<0.000000e+00> : vector<5x64xf32>
    %271 = tpu.matmul %268, %270, %cst_121 {dimension_numbers = #tpu.dot_dimension_numbers<[1], [0], [0], [1], [0, 0, 1, 1], [], []>} : vector<5x64xf32>, vector<64x64xf32>, vector<5x64xf32> -> vector<5x64xf32>
    %c1_122 = arith.constant 1 : index
    %c0_123 = arith.constant 0 : index
    %c0_124 = arith.constant 0 : index
    %272 = vector.load %arg10[%c1_122, %c0_123, %c0_124] : memref<2x1x64xf32, #tpu.memory_space<vmem>>, vector<1x1x64xf32>
    %273 = vector.shape_cast %272 : vector<1x1x64xf32> to vector<1x64xf32>
    %274 = vector.broadcast %273 : vector<1x64xf32> to vector<5x64xf32>
    %275 = arith.addf %271, %274 : vector<5x64xf32>
    %276 = arith.addf %166, %275 : vector<5x64xf32>
    %c1_125 = arith.constant 1 : index
    %c0_126 = arith.constant 0 : index
    %c0_127 = arith.constant 0 : index
    %277 = vector.load %arg11[%c1_125, %c0_126, %c0_127] : memref<2x1x64xf32, #tpu.memory_space<vmem>>, vector<1x1x64xf32>
    %278 = vector.shape_cast %277 : vector<1x1x64xf32> to vector<1x64xf32>
    %c1_128 = arith.constant 1 : index
    %c0_129 = arith.constant 0 : index
    %c0_130 = arith.constant 0 : index
    %279 = vector.load %arg12[%c1_128, %c0_129, %c0_130] : memref<2x1x64xf32, #tpu.memory_space<vmem>>, vector<1x1x64xf32>
    %280 = vector.shape_cast %279 : vector<1x1x64xf32> to vector<1x64xf32>
    %cst_131 = arith.constant dense<0.000000e+00> : vector<5xf32>
    %281 = vector.multi_reduction <add>, %276, %cst_131 [1] : vector<5x64xf32> to vector<5xf32>
    %282 = vector.shape_cast %281 : vector<5xf32> to vector<5x1xf32>
    %cst_132 = arith.constant 6.400000e+01 : f32
    %283 = vector.broadcast %cst_132 : f32 to vector<5x1xf32>
    %284 = arith.divf %282, %283 : vector<5x1xf32>
    %285 = vector.broadcast %284 : vector<5x1xf32> to vector<5x64xf32>
    %286 = arith.subf %276, %285 : vector<5x64xf32>
    %287 = arith.mulf %286, %286 : vector<5x64xf32>
    %cst_133 = arith.constant dense<0.000000e+00> : vector<5xf32>
    %288 = vector.multi_reduction <add>, %287, %cst_133 [1] : vector<5x64xf32> to vector<5xf32>
    %289 = vector.shape_cast %288 : vector<5xf32> to vector<5x1xf32>
    %cst_134 = arith.constant 6.400000e+01 : f32
    %290 = vector.broadcast %cst_134 : f32 to vector<5x1xf32>
    %291 = arith.divf %289, %290 : vector<5x1xf32>
    %292 = vector.broadcast %284 : vector<5x1xf32> to vector<5x64xf32>
    %293 = arith.subf %276, %292 : vector<5x64xf32>
    %cst_135 = arith.constant 9.99999997E-7 : f32
    %294 = vector.broadcast %cst_135 : f32 to vector<5x1xf32>
    %295 = arith.addf %291, %294 : vector<5x1xf32>
    %296 = math.rsqrt %295 : vector<5x1xf32>
    %297 = vector.broadcast %296 : vector<5x1xf32> to vector<5x64xf32>
    %298 = arith.mulf %293, %297 : vector<5x64xf32>
    %299 = vector.broadcast %278 : vector<1x64xf32> to vector<5x64xf32>
    %300 = arith.mulf %298, %299 : vector<5x64xf32>
    %301 = vector.broadcast %280 : vector<1x64xf32> to vector<5x64xf32>
    %302 = arith.addf %300, %301 : vector<5x64xf32>
    %c1_136 = arith.constant 1 : index
    %c0_137 = arith.constant 0 : index
    %c0_138 = arith.constant 0 : index
    %303 = vector.load %arg13[%c1_136, %c0_137, %c0_138] : memref<2x64x256xf32, #tpu.memory_space<vmem>>, vector<1x64x256xf32>
    %304 = vector.shape_cast %303 : vector<1x64x256xf32> to vector<64x256xf32>
    %cst_139 = arith.constant dense<0.000000e+00> : vector<5x256xf32>
    %305 = tpu.matmul %302, %304, %cst_139 {dimension_numbers = #tpu.dot_dimension_numbers<[1], [0], [0], [1], [0, 0, 1, 1], [], []>} : vector<5x64xf32>, vector<64x256xf32>, vector<5x256xf32> -> vector<5x256xf32>
    %c1_140 = arith.constant 1 : index
    %c0_141 = arith.constant 0 : index
    %c0_142 = arith.constant 0 : index
    %306 = vector.load %arg14[%c1_140, %c0_141, %c0_142] : memref<2x1x256xf32, #tpu.memory_space<vmem>>, vector<1x1x256xf32>
    %307 = vector.shape_cast %306 : vector<1x1x256xf32> to vector<1x256xf32>
    %308 = vector.broadcast %307 : vector<1x256xf32> to vector<5x256xf32>
    %309 = arith.addf %305, %308 : vector<5x256xf32>
    %cst_143 = arith.constant 5.000000e-01 : f32
    %310 = vector.broadcast %cst_143 : f32 to vector<5x256xf32>
    %311 = arith.mulf %310, %309 : vector<5x256xf32>
    %cst_144 = arith.constant 0.707106769 : f32
    %312 = vector.broadcast %cst_144 : f32 to vector<5x256xf32>
    %313 = arith.mulf %309, %312 : vector<5x256xf32>
    %314 = math.erf %313 : vector<5x256xf32>
    %cst_145 = arith.constant 1.000000e+00 : f32
    %315 = vector.broadcast %cst_145 : f32 to vector<5x256xf32>
    %316 = arith.addf %315, %314 : vector<5x256xf32>
    %317 = arith.mulf %311, %316 : vector<5x256xf32>
    %c1_146 = arith.constant 1 : index
    %c0_147 = arith.constant 0 : index
    %c0_148 = arith.constant 0 : index
    %318 = vector.load %arg15[%c1_146, %c0_147, %c0_148] : memref<2x256x64xf32, #tpu.memory_space<vmem>>, vector<1x256x64xf32>
    %319 = vector.shape_cast %318 : vector<1x256x64xf32> to vector<256x64xf32>
    %cst_149 = arith.constant dense<0.000000e+00> : vector<5x64xf32>
    %320 = tpu.matmul %317, %319, %cst_149 {dimension_numbers = #tpu.dot_dimension_numbers<[1], [0], [0], [1], [0, 0, 1, 1], [], []>} : vector<5x256xf32>, vector<256x64xf32>, vector<5x64xf32> -> vector<5x64xf32>
    %321 = arith.addf %276, %320 : vector<5x64xf32>
    %c1_150 = arith.constant 1 : index
    %c0_151 = arith.constant 0 : index
    %c0_152 = arith.constant 0 : index
    %322 = vector.load %arg16[%c1_150, %c0_151, %c0_152] : memref<2x1x64xf32, #tpu.memory_space<vmem>>, vector<1x1x64xf32>
    %323 = vector.shape_cast %322 : vector<1x1x64xf32> to vector<1x64xf32>
    %324 = vector.broadcast %323 : vector<1x64xf32> to vector<5x64xf32>
    %325 = arith.addf %321, %324 : vector<5x64xf32>
    %326 = vector.extract_strided_slice %325 {offsets = [0, 0], sizes = [1, 64], strides = [1, 1]} : vector<5x64xf32> to vector<1x64xf32>
    %c0_153 = arith.constant 0 : index
    %c0_154 = arith.constant 0 : index
    %327 = vector.load %arg17[%c0_153, %c0_154] : memref<1x64xf32, #tpu.memory_space<vmem>>, vector<1x64xf32>
    %c0_155 = arith.constant 0 : index
    %c0_156 = arith.constant 0 : index
    %328 = vector.load %arg18[%c0_155, %c0_156] : memref<1x64xf32, #tpu.memory_space<vmem>>, vector<1x64xf32>
    %cst_157 = arith.constant dense<0.000000e+00> : vector<1xf32>
    %329 = vector.multi_reduction <add>, %326, %cst_157 [1] : vector<1x64xf32> to vector<1xf32>
    %330 = vector.shape_cast %329 : vector<1xf32> to vector<1x1xf32>
    %cst_158 = arith.constant 6.400000e+01 : f32
    %331 = vector.broadcast %cst_158 : f32 to vector<1x1xf32>
    %332 = arith.divf %330, %331 : vector<1x1xf32>
    %333 = vector.broadcast %332 : vector<1x1xf32> to vector<1x64xf32>
    %334 = arith.subf %326, %333 : vector<1x64xf32>
    %335 = arith.mulf %334, %334 : vector<1x64xf32>
    %cst_159 = arith.constant dense<0.000000e+00> : vector<1xf32>
    %336 = vector.multi_reduction <add>, %335, %cst_159 [1] : vector<1x64xf32> to vector<1xf32>
    %337 = vector.shape_cast %336 : vector<1xf32> to vector<1x1xf32>
    %cst_160 = arith.constant 6.400000e+01 : f32
    %338 = vector.broadcast %cst_160 : f32 to vector<1x1xf32>
    %339 = arith.divf %337, %338 : vector<1x1xf32>
    %340 = vector.broadcast %332 : vector<1x1xf32> to vector<1x64xf32>
    %341 = arith.subf %326, %340 : vector<1x64xf32>
    %cst_161 = arith.constant 9.99999997E-7 : f32
    %342 = vector.broadcast %cst_161 : f32 to vector<1x1xf32>
    %343 = arith.addf %339, %342 : vector<1x1xf32>
    %344 = math.rsqrt %343 : vector<1x1xf32>
    %345 = vector.broadcast %344 : vector<1x1xf32> to vector<1x64xf32>
    %346 = arith.mulf %341, %345 : vector<1x64xf32>
    %347 = arith.mulf %346, %327 : vector<1x64xf32>
    %348 = arith.addf %347, %328 : vector<1x64xf32>
    %c0_162 = arith.constant 0 : index
    %c0_163 = arith.constant 0 : index
    %349 = vector.load %arg19[%c0_162, %c0_163] : memref<64x128xf32, #tpu.memory_space<vmem>>, vector<64x128xf32>
    %cst_164 = arith.constant dense<0.000000e+00> : vector<1x128xf32>
    %350 = tpu.matmul %348, %349, %cst_164 {dimension_numbers = #tpu.dot_dimension_numbers<[1], [0], [0], [1], [0, 0, 1, 1], [], []>} : vector<1x64xf32>, vector<64x128xf32>, vector<1x128xf32> -> vector<1x128xf32>
    %c0_165 = arith.constant 0 : index
    %c0_166 = arith.constant 0 : index
    %351 = vector.load %arg20[%c0_165, %c0_166] : memref<1x128xf32, #tpu.memory_space<vmem>>, vector<1x128xf32>
    %352 = arith.addf %350, %351 : vector<1x128xf32>
    %c0_167 = arith.constant 0 : index
    %c0_168 = arith.constant 0 : index
    %c0_169 = arith.constant 0 : index
    %353 = vector.load %arg21[%c0_167, %c0_168, %c0_169] : memref<1x1x128xf32, #tpu.memory_space<vmem>>, vector<1x1x128xf32>
    %354 = vector.shape_cast %353 : vector<1x1x128xf32> to vector<1x128xf32>
    %355 = vector.shape_cast %352 : vector<1x128xf32> to vector<1x1x128xf32>
    tpu.vector_store %arg21[%c0_167, %c0_168, %c0_169], %355 {strides = array<i32>} : memref<1x1x128xf32, #tpu.memory_space<vmem>>, vector<1x1x128xf32>,
    return
  }
  func.func @transform_0(%arg0: i32) -> (i32, i32, i32) {
    %c0_i32 = arith.constant 0 : i32
    %c0_i32_0 = arith.constant 0 : i32
    %c0_i32_1 = arith.constant 0 : i32
    return %arg0, %c0_i32, %c0_i32_0 : i32, i32, i32
  }
  func.func @transform_1(%arg0: i32) -> (i32, i32) {
    %c0_i32 = arith.constant 0 : i32
    %c0_i32_0 = arith.constant 0 : i32
    %c0_i32_1 = arith.constant 0 : i32
    return %c0_i32, %c0_i32_0 : i32, i32
  }
  func.func @transform_2(%arg0: i32) -> (i32, i32) {
    %c0_i32 = arith.constant 0 : i32
    %c0_i32_0 = arith.constant 0 : i32
    %c0_i32_1 = arith.constant 0 : i32
    return %c0_i32, %c0_i32_0 : i32, i32
  }
  func.func @transform_3(%arg0: i32) -> (i32, i32) {
    %c0_i32 = arith.constant 0 : i32
    %c0_i32_0 = arith.constant 0 : i32
    %c0_i32_1 = arith.constant 0 : i32
    return %c0_i32, %c0_i32_0 : i32, i32
  }
  func.func @transform_4(%arg0: i32) -> (i32, i32, i32) {
    %c0_i32 = arith.constant 0 : i32
    %c0_i32_0 = arith.constant 0 : i32
    %c0_i32_1 = arith.constant 0 : i32
    %c0_i32_2 = arith.constant 0 : i32
    return %c0_i32, %c0_i32_0, %c0_i32_1 : i32, i32, i32
  }
  func.func @transform_5(%arg0: i32) -> (i32, i32, i32) {
    %c0_i32 = arith.constant 0 : i32
    %c0_i32_0 = arith.constant 0 : i32
    %c0_i32_1 = arith.constant 0 : i32
    %c0_i32_2 = arith.constant 0 : i32
    return %c0_i32, %c0_i32_0, %c0_i32_1 : i32, i32, i32
  }
  func.func @transform_6(%arg0: i32) -> (i32, i32, i32) {
    %c0_i32 = arith.constant 0 : i32
    %c0_i32_0 = arith.constant 0 : i32
    %c0_i32_1 = arith.constant 0 : i32
    %c0_i32_2 = arith.constant 0 : i32
    return %c0_i32, %c0_i32_0, %c0_i32_1 : i32, i32, i32
  }
  func.func @transform_7(%arg0: i32) -> (i32, i32, i32) {
    %c0_i32 = arith.constant 0 : i32
    %c0_i32_0 = arith.constant 0 : i32
    %c0_i32_1 = arith.constant 0 : i32
    %c0_i32_2 = arith.constant 0 : i32
    return %c0_i32, %c0_i32_0, %c0_i32_1 : i32, i32, i32
  }
  func.func @transform_8(%arg0: i32) -> (i32, i32, i32) {
    %c0_i32 = arith.constant 0 : i32
    %c0_i32_0 = arith.constant 0 : i32
    %c0_i32_1 = arith.constant 0 : i32
    %c0_i32_2 = arith.constant 0 : i32
    return %c0_i32, %c0_i32_0, %c0_i32_1 : i32, i32, i32
  }
  func.func @transform_9(%arg0: i32) -> (i32, i32, i32) {
    %c0_i32 = arith.constant 0 : i32
    %c0_i32_0 = arith.constant 0 : i32
    %c0_i32_1 = arith.constant 0 : i32
    %c0_i32_2 = arith.constant 0 : i32
    return %c0_i32, %c0_i32_0, %c0_i32_1 : i32, i32, i32
  }
  func.func @transform_10(%arg0: i32) -> (i32, i32, i32) {
    %c0_i32 = arith.constant 0 : i32
    %c0_i32_0 = arith.constant 0 : i32
    %c0_i32_1 = arith.constant 0 : i32
    %c0_i32_2 = arith.constant 0 : i32
    return %c0_i32, %c0_i32_0, %c0_i32_1 : i32, i32, i32
  }
  func.func @transform_11(%arg0: i32) -> (i32, i32, i32) {
    %c0_i32 = arith.constant 0 : i32
    %c0_i32_0 = arith.constant 0 : i32
    %c0_i32_1 = arith.constant 0 : i32
    %c0_i32_2 = arith.constant 0 : i32
    return %c0_i32, %c0_i32_0, %c0_i32_1 : i32, i32, i32
  }
  func.func @transform_12(%arg0: i32) -> (i32, i32, i32) {
    %c0_i32 = arith.constant 0 : i32
    %c0_i32_0 = arith.constant 0 : i32
    %c0_i32_1 = arith.constant 0 : i32
    %c0_i32_2 = arith.constant 0 : i32
    return %c0_i32, %c0_i32_0, %c0_i32_1 : i32, i32, i32
  }
  func.func @transform_13(%arg0: i32) -> (i32, i32, i32) {
    %c0_i32 = arith.constant 0 : i32
    %c0_i32_0 = arith.constant 0 : i32
    %c0_i32_1 = arith.constant 0 : i32
    %c0_i32_2 = arith.constant 0 : i32
    return %c0_i32, %c0_i32_0, %c0_i32_1 : i32, i32, i32
  }
  func.func @transform_14(%arg0: i32) -> (i32, i32, i32) {
    %c0_i32 = arith.constant 0 : i32
    %c0_i32_0 = arith.constant 0 : i32
    %c0_i32_1 = arith.constant 0 : i32
    %c0_i32_2 = arith.constant 0 : i32
    return %c0_i32, %c0_i32_0, %c0_i32_1 : i32, i32, i32
  }
  func.func @transform_15(%arg0: i32) -> (i32, i32, i32) {
    %c0_i32 = arith.constant 0 : i32
    %c0_i32_0 = arith.constant 0 : i32
    %c0_i32_1 = arith.constant 0 : i32
    %c0_i32_2 = arith.constant 0 : i32
    return %c0_i32, %c0_i32_0, %c0_i32_1 : i32, i32, i32
  }
  func.func @transform_16(%arg0: i32) -> (i32, i32) {
    %c0_i32 = arith.constant 0 : i32
    %c0_i32_0 = arith.constant 0 : i32
    %c0_i32_1 = arith.constant 0 : i32
    return %c0_i32, %c0_i32_0 : i32, i32
  }
  func.func @transform_17(%arg0: i32) -> (i32, i32) {
    %c0_i32 = arith.constant 0 : i32
    %c0_i32_0 = arith.constant 0 : i32
    %c0_i32_1 = arith.constant 0 : i32
    return %c0_i32, %c0_i32_0 : i32, i32
  }
  func.func @transform_18(%arg0: i32) -> (i32, i32) {
    %c0_i32 = arith.constant 0 : i32
    %c0_i32_0 = arith.constant 0 : i32
    %c0_i32_1 = arith.constant 0 : i32
    return %c0_i32, %c0_i32_0 : i32, i32
  }
  func.func @transform_19(%arg0: i32) -> (i32, i32) {
    %c0_i32 = arith.constant 0 : i32
    %c0_i32_0 = arith.constant 0 : i32
    %c0_i32_1 = arith.constant 0 : i32
    return %c0_i32, %c0_i32_0 : i32, i32
  }
  func.func @transform_20(%arg0: i32) -> (i32, i32, i32) {
    %c0_i32 = arith.constant 0 : i32
    %c0_i32_0 = arith.constant 0 : i32
    %c0_i32_1 = arith.constant 0 : i32
    return %arg0, %c0_i32, %c0_i32_0 : i32, i32, i32
  }
}

</mosaic_0001>

<bundles_post_ra>
// kernel: vit_forward.1
= control target key start
LH: loop header
LB: loop body
LE: loop exit
PB: predicated region body
PF: predicated region fallthrough
CT: control target
= control target key end

     0   :  { %s5654_s0 = inlined_call_operand.vmem [shape: f32[2,4,768], index: 0, kind: input, shape index: {}]   ;;  %s5655_s1 = inlined_call_operand.vmem [shape: f32[768,64], index: 1, kind: input, shape index: {}]   ;;  %s5656_s2 = inlined_call_operand.vmem [shape: f32[1,64], index: 2, kind: input, shape index: {}]   ;;  %s5657_s3 = inlined_call_operand.vmem [shape: f32[5,64], index: 3, kind: input, shape index: {}]   ;;  %s5658_s4 = inlined_call_operand.vmem [shape: f32[2,1,64], index: 4, kind: input, shape index: {}]   ;;  %s5659_s5 = inlined_call_operand.vmem [shape: f32[2,1,64], index: 5, kind: input, shape index: {}]   ;;  %s5660_s6 = inlined_call_operand.vmem [shape: f32[2,64,192], index: 6, kind: input, shape index: {}]   ;;  %s5661_s7 = inlined_call_operand.vmem [shape: f32[2,1,192], index: 7, kind: input, shape index: {}]   ;;  %s5662_s8 = inlined_call_operand.vmem [shape: f32[2,64,64], index: 8, kind: input, shape index: {}]   ;;  %s5663_s9 = inlined_call_operand.vmem [shape: f32[2,1,64], index: 9, kind: input, shape index: {}]   ;;  %s5664_s10 = inlined_call_operand.vmem [shape: f32[2,1,64], index: 10, kind: input, shape index: {}]   ;;  %s5665_s11 = inlined_call_operand.vmem [shape: f32[2,1,64], index: 11, kind: input, shape index: {}]   ;;  %s5666_s12 = inlined_call_operand.vmem [shape: f32[2,64,256], index: 12, kind: input, shape index: {}]   ;;  %s5667_s13 = inlined_call_operand.vmem [shape: f32[2,1,256], index: 13, kind: input, shape index: {}]   ;;  %s5668_s14 = inlined_call_operand.vmem [shape: f32[2,256,64], index: 14, kind: input, shape index: {}]   ;;  %s5669_s15 = inlined_call_operand.vmem [shape: f32[2,1,64], index: 15, kind: input, shape index: {}]   ;;  %s5670_s16 = inlined_call_operand.vmem [shape: f32[1,64], index: 16, kind: input, shape index: {}]   ;;  %s5671_s17 = inlined_call_operand.vmem [shape: f32[1,64], index: 17, kind: input, shape index: {}]   ;;  %s5672_s18 = inlined_call_operand.vmem [shape: f32[64,128], index: 18, kind: input, shape index: {}]   ;;  %s5673_s19 = inlined_call_operand.vmem [shape: f32[1,128], index: 19, kind: input, shape index: {}]   ;;  %s5674_s20 = inlined_call_operand.hbm [shape: f32[2,1,128], index: 20, kind: output, shape index: {}]  }
   0x1   :  { %5696 = sst [smem:[#allocation11_spill]] %s5654_s0 }
   0x2   :  { %5697 = sst [smem:[#allocation12_spill]] %s5655_s1 }
   0x3   :  { %5698 = sst [smem:[#allocation13_spill]] %s5656_s2 }
   0x4   :  { %5699 = sst [smem:[#allocation14_spill]] %s5657_s3 }
   0x5   :  { %5700 = sst [smem:[#allocation15_spill]] %s5658_s4 }
   0x6   :  { %5701 = sst [smem:[#allocation16_spill]] %s5673_s19 }
   0x7   :  { %5702 = sst [smem:[#allocation17_spill]] %s5674_s20 }
   0x8   :  { %25 = vsyncpa [#allocation3], 0 }
   0x9   :  { %27 = vsyncpa [#allocation3 + $0x1], 0  ;;  %s4502_s1 = smov 0   ;;  %s4504_s22 = smov 0  }
   0xa   :  { %s4506_s23 = smov 0   ;;  %s4508_s24 = smov 0  }
   0xb LB: > { %5703 = sst [smem:[#allocation5_spill]] %s4372_s1  ;;  %s4523_s2 = sadd.s32 4294967295, %s4384_s24   ;;  %s4384_s24 = sphi %s4508_s24, %s5727_s24   ;;  %s4380_s23 = sphi %s4506_s23, %s5732_s23   ;;  %s4376_s22 = sphi %s4504_s22, %s5731_s22   ;;  %s4372_s1 = sphi %s4502_s1, %s5730_s1  }
   0xc   : > { %5704 = sst [smem:[#allocation6_spill]] %s4380_s23  ;;  %s3449_s25 = sadd.s32 4294967294, %s4384_s24  }
   0xd   : > { %5705 = sst [smem:[#allocation7_spill]] %s4384_s24  ;;  %s4527_s3 = sadd.s32 1, %s4384_s24  }
   0xe   : > { %5706 = sst [smem:[#allocation8_spill]] %s4527_s3  ;;  %s465_s26 = sadd.s32 1, %s4380_s23 }
   0xf   : > { %s462_s27 = ssub.s32 %s4384_s24, %s4527_s3  ;;  %p475_p0 = scmp.ne.s32.totalorder %s4380_s23, %s4376_s22 }
  0x10   : > { %p463_p1 = scmp.eq.s32.totalorder %s462_s27, 0  ;;  %p476_p2 = scmp.eq.s32.totalorder %s4523_s2, 1 }
  0x11   : > { %p481_p3 = scmp.ne.s32.totalorder %s4376_s22, %s4372_s1  ;;  %p482_p4 = scmp.eq.s32.totalorder %s3449_s25, 1 }
  0x12   : > { %s4538_s28 = scalar_select %p463_p1, %s4380_s23, %s465_s26  }
  0x13   : > { %p4540_p5 = por %p476_p2, %p475_p0  ;;  %p4544_p6 = por %p482_p4, %p481_p3 }
  0x14   : > { %5707 = sst [smem:[#allocation9_spill]] %s4538_s28  ;;  %p3452_p7 = scmp.ge.s32.totalorder %s4384_s24, 1 }
  0x15   : > { %s5709_s29 = scalar_select %p4544_p6, 1, 0 }
  0x16   : > { %p565_p8 = scmp.lt.s32.totalorder %s4384_s24, 3 }
  0x17   : > { %5710 = sst [smem:[#allocation10_spill]] %s5709_s29 }
  0x18   : > { %p566_p9 = pnand %p3452_p7, %p565_p8 }
  0x19   : > { %s5711_s21 = sld [smem:[#allocation12_spill]] (!%p566_p9)  ;;  %p622_p10 = scmp.lt.s32.totalorder (!%p566_p9), %s4523_s2, 1  ;;  %vm949_vm0 = vcmask (!%p566_p9), 1040384   ;;  %vm955_vm1 = vcmask (!%p566_p9), 520192   ;;  %vm1012_vm2 = vcmask (!%p566_p9), 523264   ;;  %vm4387_vm3 = vmmov (!%p566_p9), 0  }
  0x1a   : > { %569 = sbr.rel (%p566_p9) target bundleno = 7962 (0x1f1a), region = 100  ;;  %s5713_s27 = sld [smem:[#allocation13_spill]] (!%p566_p9)  ;;  %vm1090_vm4 = vcmask (!%p566_p9), 130048   ;;  %vm1182_vm5 = vcmask (!%p566_p9), 1044480   ;;  %vm1166_vm6 = vcmask (!%p566_p9), 36864   ;;  %vm1178_vm7 = vcmask (!%p566_p9), 39936  }
  0x1b   : > { %s5714_s25 = sld [smem:[#allocation14_spill]] (!%p566_p9)  ;;  %s5715_s0 = sld [smem:[#allocation15_spill]] (!%p566_p9)  ;;  %vm1770_vm8 = vcmask (!%p566_p9), 261120   ;;  %vm1772_vm9 = vcmask (!%p566_p9), 392192   ;;  %vm3282_vm10 = vcmask (!%p566_p9), 516096  }
  0x1c   : > { %s5690_s23 = smov (!%p566_p9), 48   ;;  %s5692_s20 = smov (!%p566_p9), 32  }
  0x1d   : > { %s5688_s3 = smov (!%p566_p9), 96   ;;  %s5686_s1 = smov (!%p566_p9), 16  }
  0x1e   : > { %s5684_s29 = smov (!%p566_p9), 80   ;;  %s5720_s26 = smov (!%p566_p9), 80  }
  0x1f   : > { %v646_v0 = vld [vmem:[%s5711_s21 + $0x80] sm:$0xff] (!%p566_p9)  ;;  %v647_v1 = vld [vmem:[%s5711_s21 + $0x88] sm:$0xff] (!%p566_p9)  ;;  %v648_v11 = vld [vmem:[%s5711_s21 + $0x90] sm:$0xff] (!%p566_p9) }
  0x20   : > { %v678_v2 = vld [vmem:[%s5711_s21 + $0x180] sm:$0xff] (!%p566_p9)  ;;  %v3959_v3 = vpack.c.bf16 (!%p566_p9), %v647_v1, %v646_v0  ;;  %v679_v4 = vld [vmem:[%s5711_s21 + $0x188] sm:$0xff] (!%p566_p9)  ;;  %v649_v13 = vld [vmem:[%s5711_s21 + $0x98] sm:$0xff] (!%p566_p9) }
  0x21   : > { %v630_v5 = vld [vmem:[%s5711_s21] sm:$0xff]  ;;  %v631_v6 = vld [vmem:[%s5711_s21 + $0x8] sm:$0xff]  ;;  %v3991_v7 = vpack.c.bf16 %v679_v4, %v678_v2  ;;  %v680_v14 = vld [vmem:[%s5711_s21 + $0x190] sm:$0xff]  ;;  %v3963_v16 = vpack.c.bf16 %v649_v13, %v648_v11  ;;  %s4653_s30 = scalar_select %p622_p10, %s4523_s2, 1 }
  0x22   : > { %v3961_v8 = vpack.c.bf16 %v631_v6, %v630_v5  ;;  %v662_v9 = vld [vmem:[%s5711_s21 + $0x100] sm:$0xff]  ;;  %v663_v10 = vld [vmem:[%s5711_s21 + $0x108] sm:$0xff]  ;;  %3960 = vmatprep.subr.bf16.mxu0 %v3959_v3  ;;  %v681_v15 = vld [vmem:[%s5711_s21 + $0x198] sm:$0xff] }
  0x23   : > { %v3993_v12 = vpack.c.bf16 %v663_v10, %v662_v9  ;;  %3992 = vmatprep.subr.bf16.mxu1 %v3991_v7  ;;  %v3995_v17 = vpack.c.bf16 %v681_v15, %v680_v14  ;;  %v632_v18 = vld [vmem:[%s5711_s21 + $0x10] sm:$0xff]  ;;  %v633_v19 = vld [vmem:[%s5711_s21 + $0x18] sm:$0xff]  ;;  %v650_v23 = vld [vmem:[%s5711_s21 + $0xa0] sm:$0xff]  ;;  %s4219_s24 = smul.u32 24, %s4653_s30  ;;  %s5712_s30 = sld [smem:[#allocation11_spill]] }
  0x24   : > { %3962 = vmatpush3.bf16.msra.mxu0 %v3961_v8  ;;  %v664_v20 = vld [vmem:[%s5711_s21 + $0x110] sm:$0xff]  ;;  %v3965_v21 = vpack.c.bf16 %v633_v19, %v632_v18  ;;  %v665_v22 = vld [vmem:[%s5711_s21 + $0x118] sm:$0xff]  ;;  %v651_v24 = vld [vmem:[%s5711_s21 + $0xa8] sm:$0xff] }
  0x25   : > { %3994 = vmatpush3.bf16.msra.mxu1 %v3993_v12  ;;  %3964 = vmatprep.subr.bf16.mxu0 %v3963_v16  ;;  %v3997_v25 = vpack.c.bf16 %v665_v22, %v664_v20  ;;  %v3967_v26 = vpack.c.bf16 %v651_v24, %v650_v23  ;;  %v682_v27 = vld [vmem:[%s5711_s21 + $0x1a0] sm:$0xff]  ;;  %v683_v28 = vld [vmem:[%s5711_s21 + $0x1a8] sm:$0xff]  ;;  %v652_v35 = vld [vmem:[%s5711_s21 + $0xb0] sm:$0xff] }
  0x26   : > { %3996 = vmatprep.subr.bf16.mxu1 %v3995_v17  ;;  %v634_v29 = vld [vmem:[%s5711_s21 + $0x20] sm:$0xff]  ;;  %v3999_v30 = vpack.c.bf16 %v683_v28, %v682_v27  ;;  %v635_v31 = vld [vmem:[%s5711_s21 + $0x28] sm:$0xff]  ;;  %v653_v36 = vld [vmem:[%s5711_s21 + $0xb8] sm:$0xff] }
  0x27   : > { %v666_v32 = vld [vmem:[%s5711_s21 + $0x120] sm:$0xff]  ;;  %v667_v33 = vld [vmem:[%s5711_s21 + $0x128] sm:$0xff]  ;;  %v3969_v34 = vpack.c.bf16 %v635_v31, %v634_v29  ;;  %v684_v37 = vld [vmem:[%s5711_s21 + $0x1b0] sm:$0xff]  ;;  %v3971_v39 = vpack.c.bf16 %v653_v36, %v652_v35 }
  0x28   : > { %3966 = vmatpush3.bf16.msra.mxu0 %v3965_v21  ;;  %v4001_v38 = vpack.c.bf16 %v667_v33, %v666_v32  ;;  %v685_v40 = vld [vmem:[%s5711_s21 + $0x1b8] sm:$0xff]  ;;  %v636_v41 = vld [vmem:[%s5711_s21 + $0x30] sm:$0xff]  ;;  %v654_v46 = vld [vmem:[%s5711_s21 + $0xc0] sm:$0xff] }
  0x29   : > { %3998 = vmatpush3.bf16.msra.mxu1 %v3997_v25  ;;  %3968 = vmatprep.subr.bf16.mxu0 %v3967_v26  ;;  %v637_v42 = vld [vmem:[%s5711_s21 + $0x38] sm:$0xff]  ;;  %v4003_v43 = vpack.c.bf16 %v685_v40, %v684_v37  ;;  %v668_v44 = vld [vmem:[%s5711_s21 + $0x130] sm:$0xff]  ;;  %v655_v47 = vld [vmem:[%s5711_s21 + $0xc8] sm:$0xff]  ;;  %s4710_s19 = scalar_lea.vmem %s5712_s30, %s4219_s24  ;;  %s4389_s30 = smov 64  }
  0x2a   : > { %4000 = vmatprep.subr.bf16.mxu1 %v3999_v30  ;;  %v669_v45 = vld [vmem:[%s5711_s21 + $0x138] sm:$0xff]  ;;  %v686_v48 = vld [vmem:[%s5711_s21 + $0x1c0] sm:$0xff]  ;;  %v687_v49 = vld [vmem:[%s5711_s21 + $0x1c8] sm:$0xff]  ;;  %v3973_v50 = vpack.c.bf16 %v637_v42, %v636_v41  ;;  %v3975_v52 = vpack.c.bf16 %v655_v47, %v654_v46  ;;  %s3585_s24 = sshll.u32 %s4523_s2, 4  ;;  %s4396_s2 = smov [#allocation2]  }
  0x2b   : > { %v4005_v51 = vpack.c.bf16 %v669_v45, %v668_v44  ;;  %v638_v53 = vld [vmem:[%s5711_s21 + $0x40] sm:$0xff]  ;;  %v639_v54 = vld [vmem:[%s5711_s21 + $0x48] sm:$0xff]  ;;  %v4007_v56 = vpack.c.bf16 %v687_v49, %v686_v48  ;;  %v656_v58 = vld [vmem:[%s5711_s21 + $0xd0] sm:$0xff]  ;;  %s4326_s28 = sshll.u32 %s4396_s2, 4  ;;  %s4327_s28 = int_to_ptr.vmem [resolvable:$false] %s4326_s28 }
  0x2c   : > { %3970 = vmatpush3.bf16.msra.mxu0 %v3969_v34  ;;  %v670_v55 = vld [vmem:[%s5711_s21 + $0x140] sm:$0xff]  ;;  %v671_v57 = vld [vmem:[%s5711_s21 + $0x148] sm:$0xff]  ;;  %v657_v59 = vld [vmem:[%s5711_s21 + $0xd8] sm:$0xff]  ;;  %v3977_v62 = vpack.c.bf16 %v639_v54, %v638_v53 }
  0x2d   : > { %4002 = vmatpush3.bf16.msra.mxu1 %v4001_v38  ;;  %3972 = vmatprep.subr.bf16.mxu0 %v3971_v39  ;;  %v688_v60 = vld [vmem:[%s5711_s21 + $0x1d0] sm:$0xff]  ;;  %v689_v61 = vld [vmem:[%s5711_s21 + $0x1d8] sm:$0xff]  ;;  %v4009_v63 = vpack.c.bf16 %v671_v57, %v670_v55  ;;  %v3979_v0 = vpack.c.bf16 %v657_v59, %v656_v58  ;;  %v658_v6 = vld [vmem:[%s5711_s21 + $0xe0] sm:$0xff] }
  0x2e   : > { %4004 = vmatprep.subr.bf16.mxu1 %v4003_v43  ;;  %v640_v1 = vld [vmem:[%s5711_s21 + $0x50] sm:$0xff]  ;;  %v641_v2 = vld [vmem:[%s5711_s21 + $0x58] sm:$0xff]  ;;  %v4011_v4 = vpack.c.bf16 %v689_v61, %v688_v60  ;;  %v659_v7 = vld [vmem:[%s5711_s21 + $0xe8] sm:$0xff] }
  0x2f   : > { %v672_v3 = vld [vmem:[%s5711_s21 + $0x150] sm:$0xff]  ;;  %v673_v5 = vld [vmem:[%s5711_s21 + $0x158] sm:$0xff]  ;;  %v690_v8 = vld [vmem:[%s5711_s21 + $0x1e0] sm:$0xff]  ;;  %v3981_v10 = vpack.c.bf16 %v641_v2, %v640_v1  ;;  %v3983_v14 = vpack.c.bf16 %v659_v7, %v658_v6 }
  0x30   : > { %3974 = vmatpush3.bf16.msra.mxu0 %v3973_v50  ;;  %v691_v9 = vld [vmem:[%s5711_s21 + $0x1e8] sm:$0xff]  ;;  %v642_v11 = vld [vmem:[%s5711_s21 + $0x60] sm:$0xff]  ;;  %v4013_v13 = vpack.c.bf16 %v673_v5, %v672_v3  ;;  %v660_v20 = vld [vmem:[%s5711_s21 + $0xf0] sm:$0xff] }
  0x31   : > { %4006 = vmatpush3.bf16.msra.mxu1 %v4005_v51  ;;  %3976 = vmatprep.subr.bf16.mxu0 %v3975_v52  ;;  %v643_v12 = vld [vmem:[%s5711_s21 + $0x68] sm:$0xff]  ;;  %v674_v15 = vld [vmem:[%s5711_s21 + $0x160] sm:$0xff]  ;;  %v4015_v18 = vpack.c.bf16 %v691_v9, %v690_v8  ;;  %v661_v21 = vld [vmem:[%s5711_s21 + $0xf8] sm:$0xff] }
  0x32   : > { %4008 = vmatprep.subr.bf16.mxu1 %v4007_v56  ;;  %v627_v16 = vld [vmem:[%s4710_s19] sm:$0xff]  ;;  %v628_v17 = vld [vmem:[%s4710_s19 + $0x8] sm:$0xff]  ;;  %v692_v24 = vld [vmem:[%s5711_s21 + $0x1f0] sm:$0xff]  ;;  %v3985_v26 = vpack.c.bf16 %v643_v12, %v642_v11  ;;  %v3987_v28 = vpack.c.bf16 %v661_v21, %v660_v20 }
  0x33   : > { %v675_v19 = vld [vmem:[%s5711_s21 + $0x168] sm:$0xff]  ;;  %v729_v22 = vcombine.high %v627_v16, %v627_v16  ;;  %v730_v23 = vcombine.high %v628_v17, %v628_v17  ;;  %v693_v25 = vld [vmem:[%s5711_s21 + $0x1f8] sm:$0xff]  ;;  %v644_v29 = vld [vmem:[%s5711_s21 + $0x70] sm:$0xff] }
  0x34   : > { %3978 = vmatpush3.bf16.msra.mxu0 %v3977_v62  ;;  %v4017_v27 = vpack.c.bf16 %v675_v19, %v674_v15  ;;  %v645_v30 = vld [vmem:[%s5711_s21 + $0x78] sm:$0xff]  ;;  %v676_v31 = vld [vmem:[%s5711_s21 + $0x170] sm:$0xff]  ;;  %v4019_v32 = vpack.c.bf16 %v693_v25, %v692_v24  ;;  %v710_v34 = vld [vmem:[%s5711_s21 + $0x280] sm:$0xff] }
  0x35   : > { %4010 = vmatpush3.bf16.msra.mxu1 %v4009_v63  ;;  %3980 = vmatprep.subr.bf16.mxu0 %v3979_v0  ;;  %v677_v33 = vld [vmem:[%s5711_s21 + $0x178] sm:$0xff]  ;;  %v711_v35 = vld [vmem:[%s5711_s21 + $0x288] sm:$0xff]  ;;  %v3989_v36 = vpack.c.bf16 %v645_v30, %v644_v29  ;;  %v694_v39 = vld [vmem:[%s5711_s21 + $0x200] sm:$0xff] }
  0x36   : > { %4012 = vmatprep.subr.bf16.mxu1 %v4011_v4  ;;  %799 = vmatprep.mubr.f32.mxu0 %v729_v22  ;;  %v4021_v37 = vpack.c.bf16 %v677_v33, %v676_v31  ;;  %v4023_v38 = vpack.c.bf16 %v711_v35, %v710_v34  ;;  %v695_v40 = vld [vmem:[%s5711_s21 + $0x208] sm:$0xff]  ;;  %v712_v41 = vld [vmem:[%s5711_s21 + $0x290] sm:$0xff]  ;;  %v713_v42 = vld [vmem:[%s5711_s21 + $0x298] sm:$0xff] }
  0x37   : > { %869 = vmatprep.mubr.f32.mxu1 %v730_v23  ;;  %v4025_v43 = vpack.c.bf16 %v695_v40, %v694_v39  ;;  %v629_v44 = vld [vmem:[%s4710_s19 + $0x10] sm:$0xff]  ;;  %v4027_v45 = vpack.c.bf16 %v713_v42, %v712_v41  ;;  %v697_v47 = vld [vmem:[%s5711_s21 + $0x218] sm:$0xff]  ;;  %v714_v49 = vld [vmem:[%s5711_s21 + $0x2a0] sm:$0xff]  ;;  %s5694_s19 = smov 112  }
  0x38   : > { %3982 = vmatpush3.bf16.msra.mxu0 %v3981_v10  ;;  %v696_v46 = vld [vmem:[%s5711_s21 + $0x210] sm:$0xff]  ;;  %v731_v48 = vcombine.high %v629_v44, %v629_v44  ;;  %v715_v50 = vld [vmem:[%s5711_s21 + $0x2a8] sm:$0xff]  ;;  %v698_v53 = vld [vmem:[%s5711_s21 + $0x220] sm:$0xff] }
  0x39   : > { %4014 = vmatpush3.bf16.msra.mxu1 %v4013_v13  ;;  %3984 = vmatprep.subr.bf16.mxu0 %v3983_v14  ;;  %v4029_v51 = vpack.c.bf16 %v697_v47, %v696_v46  ;;  %v4031_v52 = vpack.c.bf16 %v715_v50, %v714_v49  ;;  %v699_v54 = vld [vmem:[%s5711_s21 + $0x228] sm:$0xff]  ;;  %v716_v55 = vld [vmem:[%s5711_s21 + $0x2b0] sm:$0xff]  ;;  %v717_v56 = vld [vmem:[%s5711_s21 + $0x2b8] sm:$0xff] }
  0x3a   : > { %4016 = vmatprep.subr.bf16.mxu1 %v4015_v18  ;;  %v4033_v57 = vpack.c.bf16 %v699_v54, %v698_v53  ;;  %v4035_v58 = vpack.c.bf16 %v717_v56, %v716_v55  ;;  %v700_v59 = vld [vmem:[%s5711_s21 + $0x230] sm:$0xff]  ;;  %v701_v60 = vld [vmem:[%s5711_s21 + $0x238] sm:$0xff]  ;;  %v718_v61 = vld [vmem:[%s5711_s21 + $0x2c0] sm:$0xff] }
  0x3b   : > { %v719_v62 = vld [vmem:[%s5711_s21 + $0x2c8] sm:$0xff]  ;;  %v4037_v63 = vpack.c.bf16 %v701_v60, %v700_v59  ;;  %v702_v1 = vld [vmem:[%s5711_s21 + $0x240] sm:$0xff]  ;;  %v720_v3 = vld [vmem:[%s5711_s21 + $0x2d0] sm:$0xff] }
  0x3c   : > { %3986 = vmatpush3.bf16.msra.mxu0 %v3985_v26  ;;  %v4039_v0 = vpack.c.bf16 %v719_v62, %v718_v61  ;;  %v703_v2 = vld [vmem:[%s5711_s21 + $0x248] sm:$0xff]  ;;  %v721_v4 = vld [vmem:[%s5711_s21 + $0x2d8] sm:$0xff]  ;;  %v704_v7 = vld [vmem:[%s5711_s21 + $0x250] sm:$0xff] }
  0x3d   : > { %4018 = vmatpush3.bf16.msra.mxu1 %v4017_v27  ;;  %3988 = vmatprep.subr.bf16.mxu0 %v3987_v28  ;;  %v4041_v5 = vpack.c.bf16 %v703_v2, %v702_v1  ;;  %v4043_v6 = vpack.c.bf16 %v721_v4, %v720_v3  ;;  %v705_v8 = vld [vmem:[%s5711_s21 + $0x258] sm:$0xff]  ;;  %v722_v9 = vld [vmem:[%s5711_s21 + $0x2e0] sm:$0xff]  ;;  %v723_v10 = vld [vmem:[%s5711_s21 + $0x2e8] sm:$0xff]  ;;  %v4386_v3 = vmov 0.0  }
  0x3e   : > { %4020 = vmatprep.subr.bf16.mxu1 %v4019_v32  ;;  %v4045_v11 = vpack.c.bf16 %v705_v8, %v704_v7  ;;  %v4047_v12 = vpack.c.bf16 %v723_v10, %v722_v9  ;;  %v706_v13 = vld [vmem:[%s5711_s21 + $0x260] sm:$0xff]  ;;  %v707_v14 = vld [vmem:[%s5711_s21 + $0x268] sm:$0xff]  ;;  %v724_v15 = vld [vmem:[%s5711_s21 + $0x2f0] sm:$0xff] }
  0x3f   : > { %v708_v19 = vld [vmem:[%s5711_s21 + $0x270] sm:$0xff]  ;;  %v709_v20 = vld [vmem:[%s5711_s21 + $0x278] sm:$0xff]  ;;  %v945_v33 = vld [vmem:[%s5713_s27] sm:$0x1] }
  0x40   : > { %3990 = vmatpush3.bf16.msra.mxu0 %v3989_v36  ;;  %v4053_v21 = vpack.c.bf16 %v709_v20, %v708_v19  ;;  %v951_v35 = vld [vmem:[%s5714_s25] sm:$0x1f]  ;;  %v989_v50 = vld [vmem:[%s5660_s6 + $0x28] sm:$0xff]  ;;  %v990_v54 = vld [vmem:[%s5660_s6 + $0x30] sm:$0xff]  ;;  %s5717_s25 = smov 32  }
  0x41   : > { %4022 = vmatpush3.bf16.msra.mxu1 %v4021_v37  ;;  %4024 = vmatprep.subr.bf16.mxu0 %v4023_v38  ;;  %v984_v47 = vld [vmem:[%s5660_s6] sm:$0xff]  ;;  %v993_v56 = vld [vmem:[%s5660_s6 + $0x48] sm:$0xff]  ;;  %v994_v60 = vld [vmem:[%s5660_s6 + $0x50] sm:$0xff] }
  0x42   : > { %v988_v53 = vld [vmem:[%s5660_s6 + $0x20] sm:$0xff]  ;;  %v997_v62 = vld [vmem:[%s5660_s6 + $0x68] sm:$0xff]  ;;  %v998_v2 = vld [vmem:[%s5660_s6 + $0x70] sm:$0xff] }
  0x43   : > { %800 = vmatmul.mubr.f32.vlgmr.msra.gmra.mrb[0].mxu0 %v627_v16  ;;  %v725_v16 = vld [vmem:[%s5711_s21 + $0x2f8] sm:$0xff]  ;;  %v4061_v55 = vpack.c.bf16 %v990_v54, %v988_v53  ;;  %v992_v59 = vld [vmem:[%s5660_s6 + $0x40] sm:$0xff] }
  0x44   : > { %870 = vmatmul.mubr.f32.vlgmr.msra.gmra.mrb[0].mxu1 %v628_v17  ;;  %4026 = vmatpush3.bf16.msra.mxu0 %v4025_v43  ;;  %v4049_v17 = vpack.c.bf16 %v707_v14, %v706_v13  ;;  %v4051_v18 = vpack.c.bf16 %v725_v16, %v724_v15  ;;  %v4065_v61 = vpack.c.bf16 %v994_v60, %v992_v59  ;;  %v3454_v9 = vld [vmem:[%s5715_s0] ss:$0 sm:$0xff]  ;;  %v1002_v14 = vlaneseq }
  0x45   : > { %4028 = vmatprep.subr.bf16.mxu0 %v4027_v45  ;;  %939 = vmatprep.mubr.f32.mxu0 %v731_v48  ;;  %v987_v45 = vld [vmem:[%s5660_s6 + $0x18] sm:$0xff]  ;;  %v986_v48 = vld [vmem:[%s5660_s6 + $0x10] sm:$0xff] }
  0x46   : > { %v4057_v49 = vpack.c.bf16 %v986_v48, %v984_v47  ;;  %1080 = vmatprep.mubr.f32.mxu1 %v4386_v3  ;;  %v1003_v15 = vshrl.u32 %v1002_v14, 7 }
  0x48   : > { %4030 = vmatpush3.bf16.msra.mxu0 %v4029_v51  ;;  %v991_v51 = vld [vmem:[%s5660_s6 + $0x38] sm:$0xff]  ;;  %v4926_v16 = vsub.s32 0, %v1003_v15 }
  0x49   : > { %4032 = vmatprep.subr.bf16.mxu0 %v4031_v52  ;;  %v4059_v52 = vpack.c.bf16 %v991_v51, %v989_v50 }
  0x4c   : > { %4034 = vmatpush3.bf16.msra.mxu0 %v4033_v57  ;;  %v995_v57 = vld [vmem:[%s5660_s6 + $0x58] sm:$0xff] }
  0x4d   : > { %4036 = vmatprep.subr.bf16.mxu0 %v4035_v58  ;;  %v4063_v58 = vpack.c.bf16 %v995_v57, %v993_v56 }
  0x50   : > { %4038 = vmatpush3.bf16.msra.mxu0 %v4037_v63  ;;  %v999_v63 = vld [vmem:[%s5660_s6 + $0x78] sm:$0xff] }
  0x51   : > { %4040 = vmatprep.subr.bf16.mxu0 %v4039_v0  ;;  %v996_v0 = vld [vmem:[%s5660_s6 + $0x60] sm:$0xff]  ;;  %v4067_v1 = vpack.c.bf16 %v999_v63, %v997_v62 }
  0x52   : > { %v4069_v4 = vpack.c.bf16 %v998_v2, %v996_v0 }
  0x54   : > { %4042 = vmatpush3.bf16.msra.mxu0 %v4041_v5 }
  0x55   : > { %4044 = vmatprep.subr.bf16.mxu0 %v4043_v6 }
  0x58   : > { %4046 = vmatpush3.bf16.msra.mxu0 %v4045_v11  ;;  %v3455_v11 = vld [vmem:[%s5659_s5] ss:$0 sm:$0xff] }
  0x59   : > { %4048 = vmatprep.subr.bf16.mxu0 %v4047_v12 }
  0x5c   : > { %4050 = vmatpush3.bf16.msra.mxu0 %v4049_v17  ;;  %v1000_v17 = vld [vmem:[%s5661_s7] sm:$0x3] }
  0x5d   : > { %4052 = vmatprep.subr.bf16.mxu0 %v4051_v18  ;;  %v1005_v18 = vrot.slane %v1000_v17, %v4926_v16 }
  0x60   : > { %4054 = vmatpush3.bf16.msra.mxu0 %v4053_v21 }
  0x63   : > { %940 = vmatmul.mubr.f32.vlgmr.msra.gmra.mrb[2].mxu0 %v629_v44  ;;  %v985_v44 = vld [vmem:[%s5660_s6 + $0x8] sm:$0xff] }
  0x64   : > { %v4055_v46 = vpack.c.bf16 %v987_v45, %v985_v44  ;;  %3878 = vmatprep.mubr.msk.f32.mxu0 %vm4387_vm3, %v4386_v3 }
  0x66   : > { %4056 = vmatprep.subr.bf16.mxu1 %v4055_v46 }
  0x67   : > { %4058 = vmatpush1.bf16.msra.mxu1 %v4057_v49 }
  0x68   : > { %4060 = vmatprep.subr.bf16.mxu1 %v4059_v52 }
  0x6b   : > { %4062 = vmatpush1.bf16.msra.mxu1 %v4061_v55 }
  0x6c   : > { %4064 = vmatprep.subr.bf16.mxu1 %v4063_v58 }
  0x6f   : > { %4066 = vmatpush1.bf16.msra.mxu1 %v4065_v61 }
  0x70   : > { %4068 = vmatprep.subr.bf16.mxu1 %v4067_v1 }
  0x73   : > { %4070 = vmatpush1.bf16.msra.mxu1 %v4069_v4 }
  0x74   : > { %3822 = vmatprep.subr.mxu1 %v4386_v3 }
 0x116   : > { %v3620_v22 = vpop.f32.mrb[0].mxu0 }
 0x117   : > { %v3655_v23 = vpop.f32.mrb[0].mxu1  ;;  %v3621_v24 = vpop.f32.mrb[1].mxu0 }
 0x118   : > { %v3622_v25 = vadd.f32 %v3621_v24, %v3620_v22  ;;  %v3656_v26 = vpop.f32.mrb[1].mxu1  ;;  %v4938_v22 = vsub.s32 1, %v1003_v15 }
 0x119   : > { %v3657_v27 = vadd.f32 %v3656_v26, %v3655_v23 }
 0x11a   : > { %v1009_v23 = vrot.slane %v1000_v17, %v4938_v22 }
 0x11b   : > { %v872_v28 = vadd.f32 %v3657_v27, %v3622_v25 }
 0x136   : > { %v3690_v29 = vpop.f32.mrb[2].mxu0 }
 0x137   : > { %v3691_v30 = vpop.f32.mrb[3].mxu0 }
 0x138   : > { %v3692_v31 = vadd.f32 %v3691_v30, %v3690_v29 }
 0x13a   : > { %v942_v32 = vadd.f32 %v3692_v31, %v872_v28 }
 0x13c   : > { %v947_v34 = vrot.slane %v942_v32, 7 }
 0x13e   : > { %v950_v36 = vsel %vm949_vm0, %v945_v33, %v947_v34 }
 0x13f   : > { %v4859_v37 = vadd.f32 %v951_v35, %v950_v36 }
 0x141   : > { %v956_v38 = vsel %vm955_vm1, %v4859_v37, 0.0 }
 0x142   : > { %957 = vadd.xlane.f32.xlu0 %v956_v38 }
 0x1cf   : > { %v958_v39 = vpop.xlane.xlu0 %957 }
 0x1d0   : > { %v960_v40 = vmul.f32 0.015625, %v958_v39 }
 0x1d2   : > { %v961_v41 = vsub.f32 %v4859_v37, %v960_v40 }
 0x1d4   : > { %v962_v42 = vmul.f32 %v961_v41, %v961_v41 }
 0x1d6   : > { %v963_v43 = vsel %vm955_vm1, %v962_v42, 0.0 }
 0x1d7   : > { %964 = vadd.xlane.f32.xlu0 %v963_v43 }
 0x264   : > { %v965_v5 = vpop.xlane.xlu0 %964 }
 0x265   : > { %v966_v6 = vmul.f32 0.015625, %v965_v5 }
 0x267   : > { %v967_v7 = vadd.f32 1e-06, %v966_v6 }
 0x269   : > { %4272 = vrsqrt.f32 %v967_v7 }
 0x273   : > { %v4273_v8 = vpop.eup %4272 }
 0x274   : > { %v969_v10 = vmul.f32 %v4273_v8, %v961_v41 }
 0x276   : > { %v976_v12 = vmul.f32 %v3454_v9, %v969_v10 }
 0x278   : > { %v983_v13 = vadd.f32 %v3455_v11, %v976_v12 }
 0x27a   : > { %3456 = vmatmul.mubr.msk.f32.vlgmr.msra.gmra.mrb[2].mxu1 %vm1012_vm2, %v983_v13 }
 0x27b   : > { %3824 = vmatprep.mubr.msk.f32.mxu1 %vm4387_vm3, %v4386_v3 }
 0x34d   : > { %v1082_v19 = vpop.f32.mrb[2].mxu1 }
 0x34e   : > { %v4932_v20 = vadd.f32 %v1082_v19, %v1005_v18  ;;  %v1084_v21 = vpop.f32.mrb[3].mxu1 }
 0x34f   : > { %v4943_v25 = vadd.f32 %v1084_v21, %v1009_v23 }
 0x350   : > { %1258 = vrot.lane.b32.xlu0 %v4932_v20, %s5690_s23  ;;  %1088 = vrot.lane.b32.xlu1 %v4932_v20, %s4389_s30 }
 0x3c2   : > { %v1089_v24 = vpop.permute.xlu1 %1088  ;;  %v1259_v35 = vpop.permute.xlu0 %1258 }
 0x3c3   : > { %3823 = vmatpush3.xpose.msk.msra.mxu1 %vm1090_vm4, %v1089_v24 }
 0x3c4   : > { %3827 = vmatprep.subr.mxu1 %v4386_v3 }
 0x3c6   : > { %3825 = vmatmul.mubr.msk.f32.vlgmr.msra.gmra.mrb[4].mxu1 %vm1090_vm4, %v4932_v20 }
 0x3c7   : > { %3828 = vmatpush3.msk.msra.mxu1 %vm1182_vm5, %v4943_v25  ;;  %3829 = vmatprep.mubr.msk.f32.mxu1 %vm4387_vm3, %v4386_v3 }
 0x3c8   : > { %3832 = vmatprep.subr.mxu1 %v4386_v3 }
 0x499   : > { %v1161_v26 = vpop.f32.mrb[4].mxu1 }
 0x49a   : > { %v1165_v27 = vmul.f32 0.25, %v1161_v26  ;;  %v3826_v28 = vpop.f32.mrb[5].mxu1 }
 0x49c   : > { %v1167_v29 = vsel %vm1166_vm6, %v1165_v27, -inf }
 0x49d   : > { %1168 = vmax.xlane.f32.xlu1 %v1167_v29 }
 0x4ae   : > { %1346 = vrot.lane.b32.xlu1 %v4943_v25, %s5694_s19 }
 0x4b2   : > { %1425 = vrot.lane.b32.xlu1 %v4932_v20, %s5692_s20 }
 0x52a   : > { %v1169_v30 = vpop.xlane.xlu1 %1168 }
 0x52b   : > { %v1170_v31 = vsub.f32 %v1165_v27, %v1169_v30  ;;  %v1774_v30 = vld [vmem:[%s5662_s8] sm:$0xff] }
 0x52d   : > { %v1171_v32 = vmul.f32 1.442695, %v1170_v31  ;;  %v1776_v31 = vld [vmem:[%s5662_s8 + $0x10] sm:$0xff] }
 0x52e   : > { %v1347_v41 = vpop.permute.xlu1 %1346 }
 0x52f   : > { %4274 = vpow2.f32 %v1171_v32  ;;  %v4395_v32 = vmov 0.0|0.0  }
 0x530   : > { %4071 = vmatprep.subr.bf16.mxu0 %v4395_v32 }
 0x532   : > { %v1426_v53 = vpop.permute.xlu1 %1425 }
 0x539   : > { %v4275_v33 = vpop.eup %4274 }
 0x53a   : > { %v1173_v34 = vsel %vm1166_vm6, %v4275_v33, 0.0 }
 0x53b   : > { %1174 = vadd.xlane.f32.xlu0 %v1173_v34  ;;  %v1777_v34 = vld [vmem:[%s5662_s8 + $0x18] sm:$0xff] }
 0x551   : > { %1256 = vrot.lane.b32.xlu0 %v4932_v20, %s5694_s19  ;;  %s5722_s19 = sld [smem:[#allocation16_spill]] }
 0x5c8   : > { %v1175_v36 = vpop.xlane.xlu0 %1174 }
 0x5c9   : > { %4276 = vrcp.f32 %v1175_v36  ;;  %v1778_v36 = vld [vmem:[%s5662_s8 + $0x20] sm:$0xff] }
 0x5cc   : > { %v1257_v40 = vpop.permute.xlu0 %1256 }
 0x5d3   : > { %v4277_v38 = vpop.eup %4276 }
 0x5d4   : > { %v1177_v39 = vmul.f32 %v4277_v38, %v4275_v33  ;;  %v1779_v38 = vld [vmem:[%s5662_s8 + $0x28] sm:$0xff] }
 0x5d6   : > { %3830 = vmatmul.mubr.msk.f32.vlgmr.msra.gmra.mrb[6].mxu1 %vm1178_vm7, %v1177_v39  ;;  %v4078_v39 = vpack.c.bf16 %v1779_v38, %v1778_v36  ;;  %v2024_v36 = vld [vmem:[%s5668_s14 + $0xa0] sm:$0xff]  ;;  %v2025_v38 = vld [vmem:[%s5668_s14 + $0xa8] sm:$0xff] }
 0x5d7   : > { %3833 = vmatpush3.xpose.msk.msra.mxu1 %vm1090_vm4, %v1259_v35  ;;  %3834 = vmatprep.mubr.msk.f32.mxu1 %vm4387_vm3, %v4386_v3  ;;  %v4075_v35 = vpack.c.bf16 %v1777_v34, %v1776_v31  ;;  %v2006_v34 = vld [vmem:[%s5668_s14 + $0x10] sm:$0xff] }
 0x5d8   : > { %3837 = vmatprep.subr.mxu1 %v4386_v3 }
 0x5da   : > { %3835 = vmatmul.mubr.msk.f32.vlgmr.msra.gmra.mrb[8].mxu1 %vm1090_vm4, %v1257_v40  ;;  %v1780_v40 = vld [vmem:[%s5662_s8 + $0x30] sm:$0xff] }
 0x5db   : > { %3838 = vmatpush3.msk.msra.mxu1 %vm1182_vm5, %v1347_v41  ;;  %3839 = vmatprep.mubr.msk.f32.mxu1 %vm4387_vm3, %v4386_v3  ;;  %v1781_v41 = vld [vmem:[%s5662_s8 + $0x38] sm:$0xff] }
 0x5dc   : > { %3842 = vmatprep.subr.mxu1 %v4386_v3 }
 0x6a9   : > { %v4970_v42 = vpop.f32.mrb[6].mxu1 }
 0x6aa   : > { %v3831_v43 = vpop.f32.mrb[7].mxu1 }
 0x6ab   : > { %v4081_v43 = vpack.c.bf16 %v1781_v41, %v1780_v40  ;;  %v4107_v40 = vpack.c.bf16 %v2025_v38, %v2024_v36  ;;  %v2008_v41 = vld [vmem:[%s5668_s14 + $0x20] sm:$0xff] }
 0x6ad   : > { %v1330_v44 = vpop.f32.mrb[8].mxu1 }
 0x6ae   : > { %v1334_v45 = vmul.f32 0.25, %v1330_v44  ;;  %v3836_v46 = vpop.f32.mrb[9].mxu1 }
 0x6b0   : > { %v1335_v47 = vsel %vm1166_vm6, %v1334_v45, -inf }
 0x6b1   : > { %1336 = vmax.xlane.f32.xlu0 %v1335_v47 }
 0x73e   : > { %v1337_v48 = vpop.xlane.xlu0 %1336 }
 0x73f   : > { %v1338_v49 = vsub.f32 %v1334_v45, %v1337_v48 }
 0x741   : > { %v1339_v50 = vmul.f32 1.442695, %v1338_v49 }
 0x743   : > { %4278 = vpow2.f32 %v1339_v50 }
 0x74d   : > { %v4279_v51 = vpop.eup %4278 }
 0x74e   : > { %v1341_v52 = vsel %vm1166_vm6, %v4279_v51, 0.0 }
 0x74f   : > { %1342 = vadd.xlane.f32.xlu1 %v1341_v52  ;;  %v3473_v52 = vld [vmem:[%s5663_s9] ss:$0 sm:$0xff] }
 0x760   : > { %1423 = vrot.lane.b32.xlu1 %v4932_v20, %s5688_s3 }
 0x7dc   : > { %v1343_v54 = vpop.xlane.xlu1 %1342 }
 0x7dd   : > { %4280 = vrcp.f32 %v1343_v54 }
 0x7e0   : > { %v1424_v57 = vpop.permute.xlu1 %1423 }
 0x7e7   : > { %v4281_v55 = vpop.eup %4280 }
 0x7e8   : > { %v1345_v56 = vmul.f32 %v4281_v55, %v4279_v51 }
 0x7ea   : > { %3840 = vmatmul.mubr.msk.f32.vlgmr.msra.gmra.mrb[10].mxu1 %vm1178_vm7, %v1345_v56 }
 0x7eb   : > { %3843 = vmatpush3.xpose.msk.msra.mxu1 %vm1090_vm4, %v1426_v53  ;;  %3844 = vmatprep.mubr.msk.f32.mxu1 %vm4387_vm3, %v4386_v3 }
 0x7ec   : > { %3847 = vmatprep.subr.mxu1 %v4386_v3 }
 0x7ee   : > { %3845 = vmatmul.mubr.msk.f32.vlgmr.msra.gmra.mrb[12].mxu1 %vm1090_vm4, %v1424_v57 }
 0x7ef   : > { %3849 = vmatprep.mubr.msk.f32.mxu1 %vm4387_vm3, %v4386_v3 }
 0x8bd   : > { %v1419_v58 = vpop.f32.mrb[10].mxu1 }
 0x8be   : > { %v3841_v59 = vpop.f32.mrb[11].mxu1 }
 0x8c1   : > { %v1497_v60 = vpop.f32.mrb[12].mxu1 }
 0x8c2   : > { %v1501_v61 = vmul.f32 0.25, %v1497_v60  ;;  %v3846_v62 = vpop.f32.mrb[13].mxu1 }
 0x8c3   : > { %v1895_v62 = vld [vmem:[%s5666_s12 + $0x18] sm:$0xff] }
 0x8c4   : > { %v1502_v63 = vsel %vm1166_vm6, %v1501_v61, -inf }
 0x8c5   : > { %1503 = vmax.xlane.f32.xlu0 %v1502_v63 }
 0x8db   : > { %1513 = vrot.lane.b32.xlu0 %v4943_v25, %s5688_s3  ;;  %s5718_s3 = smov 96  }
 0x8df   : > { %1592 = vrot.lane.b32.xlu0 %v4932_v20, %s5686_s1 }
 0x8e3   : > { %1590 = vrot.lane.b32.xlu0 %v4932_v20, %s5684_s29 }
 0x952   : > { %v1504_v0 = vpop.xlane.xlu0 %1503 }
 0x953   : > { %v1505_v1 = vsub.f32 %v1501_v61, %v1504_v0  ;;  %v1892_v0 = vld [vmem:[%s5666_s12] sm:$0xff] }
 0x955   : > { %v1506_v2 = vmul.f32 1.442695, %v1505_v1  ;;  %v1894_v1 = vld [vmem:[%s5666_s12 + $0x10] sm:$0xff] }
 0x956   : > { %v1514_v4 = vpop.permute.xlu0 %1513 }
 0x957   : > { %4282 = vpow2.f32 %v1506_v2  ;;  %3848 = vmatpush3.msk.msra.mxu1 %vm1182_vm5, %v1514_v4  ;;  %v4085_v2 = vpack.c.bf16 %v1894_v1, %v1892_v0  ;;  %v1897_v4 = vld [vmem:[%s5666_s12 + $0x28] sm:$0xff]  ;;  %v2030_v1 = vld [vmem:[%s5668_s14 + $0xd0] sm:$0xff] }
 0x958   : > { %3852 = vmatprep.subr.mxu1 %v4386_v3 }
 0x95a   : > { %v1593_v9 = vpop.permute.xlu0 %1592 }
 0x95e   : > { %v1591_v11 = vpop.permute.xlu0 %1590 }
 0x961   : > { %v4283_v5 = vpop.eup %4282 }
 0x962   : > { %v1508_v6 = vsel %vm1166_vm6, %v4283_v5, 0.0 }
 0x963   : > { %1509 = vadd.xlane.f32.xlu1 %v1508_v6 }
 0x9f0   : > { %v1510_v7 = vpop.xlane.xlu1 %1509 }
 0x9f1   : > { %4284 = vrcp.f32 %v1510_v7  ;;  %v1896_v7 = vld [vmem:[%s5666_s12 + $0x20] sm:$0xff] }
 0x9fb   : > { %v4285_v8 = vpop.eup %4284 }
 0x9fc   : > { %v1512_v10 = vmul.f32 %v4285_v8, %v4283_v5  ;;  %v1899_v5 = vld [vmem:[%s5666_s12 + $0x38] sm:$0xff]  ;;  %v1898_v8 = vld [vmem:[%s5666_s12 + $0x30] sm:$0xff] }
 0x9fd   : > { %v4087_v6 = vpack.c.bf16 %v1899_v5, %v1897_v4  ;;  %v2014_v5 = vld [vmem:[%s5668_s14 + $0x50] sm:$0xff] }
 0x9fe   : > { %3850 = vmatmul.mubr.msk.f32.vlgmr.msra.gmra.mrb[14].mxu1 %vm1178_vm7, %v1512_v10  ;;  %v1901_v10 = vld [vmem:[%s5666_s12 + $0x48] sm:$0xff] }
 0x9ff   : > { %3853 = vmatpush3.xpose.msk.msra.mxu1 %vm1090_vm4, %v1593_v9  ;;  %3854 = vmatprep.mubr.msk.f32.mxu1 %vm4387_vm3, %v4386_v3  ;;  %v4089_v9 = vpack.c.bf16 %v1898_v8, %v1896_v7  ;;  %v2032_v8 = vld [vmem:[%s5668_s14 + $0xe0] sm:$0xff] }
 0xa00   : > { %3857 = vmatprep.subr.mxu1 %v4386_v3 }
 0xa02   : > { %3855 = vmatmul.mubr.msk.f32.vlgmr.msra.gmra.mrb[16].mxu1 %vm1090_vm4, %v1591_v11  ;;  %v1903_v11 = vld [vmem:[%s5666_s12 + $0x58] sm:$0xff] }
 0xa03   : > { %3859 = vmatprep.mubr.msk.f32.mxu1 %vm4387_vm3, %v4386_v3 }
 0xad1   : > { %v1586_v12 = vpop.f32.mrb[14].mxu1 }
 0xad2   : > { %v3851_v13 = vpop.f32.mrb[15].mxu1 }
 0xad3   : > { %v1900_v13 = vld [vmem:[%s5666_s12 + $0x40] sm:$0xff] }
 0xad5   : > { %v1664_v14 = vpop.f32.mrb[16].mxu1 }
 0xad6   : > { %v1668_v15 = vmul.f32 0.25, %v1664_v14  ;;  %v3856_v17 = vpop.f32.mrb[17].mxu1  ;;  %v1902_v14 = vld [vmem:[%s5666_s12 + $0x50] sm:$0xff] }
 0xad7   : > { %v1905_v17 = vld [vmem:[%s5666_s12 + $0x68] sm:$0xff] }
 0xad8   : > { %v1669_v18 = vsel %vm1166_vm6, %v1668_v15, -inf }
 0xad9   : > { %1670 = vmax.xlane.f32.xlu0 %v1669_v18  ;;  %v1907_v18 = vld [vmem:[%s5666_s12 + $0x78] sm:$0xff] }
 0xb66   : > { %v1671_v19 = vpop.xlane.xlu0 %1670 }
 0xb67   : > { %v1672_v20 = vsub.f32 %v1668_v15, %v1671_v19  ;;  %v4093_v15 = vpack.c.bf16 %v1902_v14, %v1900_v13  ;;  %v1904_v19 = vld [vmem:[%s5666_s12 + $0x60] sm:$0xff]  ;;  %v2034_v14 = vld [vmem:[%s5668_s14 + $0xf0] sm:$0xff] }
 0xb69   : > { %v1673_v21 = vmul.f32 1.442695, %v1672_v20  ;;  %v4095_v20 = vpack.c.bf16 %v1907_v18, %v1905_v17  ;;  %v2018_v18 = vld [vmem:[%s5668_s14 + $0x70] sm:$0xff] }
 0xb6b   : > { %4286 = vpow2.f32 %v1673_v21  ;;  %v1906_v21 = vld [vmem:[%s5666_s12 + $0x70] sm:$0xff] }
 0xb75   : > { %v4287_v23 = vpop.eup %4286 }
 0xb76   : > { %v1675_v24 = vsel %vm1166_vm6, %v4287_v23, 0.0 }
 0xb77   : > { %1676 = vadd.xlane.f32.xlu1 %v1675_v24  ;;  %v2020_v24 = vld [vmem:[%s5668_s14 + $0x80] sm:$0xff] }
 0xb88   : > { %1680 = vrot.lane.b32.xlu1 %v4943_v25, %s5684_s29  ;;  %v1775_v25 = vld [vmem:[%s5662_s8 + $0x8] sm:$0xff]  ;;  %s5716_s29 = smov 112  }
 0xb89   : > { %v4072_v33 = vpack.c.bf16 %v1775_v25, %v1774_v30  ;;  %v2022_v30 = vld [vmem:[%s5668_s14 + $0x90] sm:$0xff]  ;;  %v2023_v25 = vld [vmem:[%s5668_s14 + $0x98] sm:$0xff] }
 0xb8b   : > { %4073 = vmatpush3.bf16.msra.mxu0 %v4072_v33  ;;  %v4103_v33 = vpack.c.bf16 %v2023_v25, %v2022_v30 }
 0xb8c   : > { %1758 = vrot.lane.b32.xlu1 %v1419_v58, %s5686_s1  ;;  %4074 = vmatprep.subr.bf16.mxu0 %v4395_v32  ;;  %s5719_s1 = smov 16  }
 0xb8f   : > { %4076 = vmatpush3.bf16.msra.mxu0 %v4075_v35  ;;  %v2007_v35 = vld [vmem:[%s5668_s14 + $0x18] sm:$0xff] }
 0xb90   : > { %1762 = vrot.lane.b32.xlu1 %v1586_v12, %s5692_s20  ;;  %4077 = vmatprep.subr.bf16.mxu0 %v4395_v32  ;;  %v4091_v12 = vpack.c.bf16 %v1903_v11, %v1901_v10  ;;  %v2016_v11 = vld [vmem:[%s5668_s14 + $0x60] sm:$0xff] }
 0xb93   : > { %4079 = vmatpush3.bf16.msra.mxu0 %v4078_v39  ;;  %v4105_v39 = vpack.c.bf16 %v2007_v35, %v2006_v34 }
 0xb94   : > { %4080 = vmatprep.subr.bf16.mxu0 %v4395_v32 }
 0xb97   : > { %4082 = vmatpush3.bf16.msra.mxu0 %v4081_v43  ;;  %v2009_v43 = vld [vmem:[%s5668_s14 + $0x28] sm:$0xff] }
 0xc04   : > { %v1677_v26 = vpop.xlane.xlu1 %1676 }
 0xc05   : > { %4288 = vrcp.f32 %v1677_v26  ;;  %v2021_v26 = vld [vmem:[%s5668_s14 + $0x88] sm:$0xff] }
 0xc08   : > { %v1681_v27 = vpop.permute.xlu1 %1680 }
 0xc09   : > { %3858 = vmatpush3.msk.msra.mxu1 %vm1182_vm5, %v1681_v27  ;;  %v2004_v27 = vld [vmem:[%s5668_s14] sm:$0xff] }
 0xc0c   : > { %v1759_v46 = vpop.permute.xlu1 %1758 }
 0xc0d   : > { %v1769_v48 = vsel %vm1090_vm4, %v4970_v42, %v1759_v46 }
 0xc0f   : > { %v4289_v28 = vpop.eup %4288 }
 0xc10   : > { %v1679_v29 = vmul.f32 %v4289_v28, %v4287_v23  ;;  %v1763_v47 = vpop.permute.xlu1 %1762  ;;  %v4097_v23 = vpack.c.bf16 %v1906_v21, %v1904_v19  ;;  %v4099_v28 = vpack.c.bf16 %v2021_v26, %v2020_v24  ;;  %v2019_v19 = vld [vmem:[%s5668_s14 + $0x78] sm:$0xff]  ;;  %v1908_v21 = vld [vmem:[%s5667_s13] sm:$0x3] }
 0xc11   : > { %v1771_v49 = vsel %vm1770_vm8, %v1769_v48, %v1763_v47  ;;  %v1917_v24 = vrot.slane %v1908_v21, %v4938_v22 }
 0xc12   : > { %3860 = vmatmul.mubr.msk.f32.vlgmr.msra.gmra.mrb[18].mxu1 %vm1178_vm7, %v1679_v29  ;;  %v2005_v29 = vld [vmem:[%s5668_s14 + $0x8] sm:$0xff]  ;;  %4100 = vmatprep.subr.bf16.mxu0 %v4099_v28 }
 0xc13   : > { %1987 = vmatprep.mubr.f32.mxu1 %v4386_v3  ;;  %v4101_v31 = vpack.c.bf16 %v2005_v29, %v2004_v27 }
 0xce5   : > { %v1753_v44 = vpop.f32.mrb[18].mxu1 }
 0xce6   : > { %1766 = vrot.lane.b32.xlu0 %v1753_v44, %s5690_s23  ;;  %v3861_v45 = vpop.f32.mrb[19].mxu1  ;;  %v4109_v44 = vpack.c.bf16 %v2009_v43, %v2008_v41  ;;  %s620_s23 = sand.u32 1, %s4376_s22  }
 0xce7   : > { %s3382_s27 = scalar_lea.sflag [#allocation3], %s620_s23 }
 0xd58   : > { %v1767_v50 = vpop.permute.xlu0 %1766 }
 0xd59   : > { %v1773_v51 = vsel %vm1772_vm9, %v1771_v49, %v1767_v50  ;;  %v3475_v49 = vld [vmem:[%s5664_s10] ss:$0 sm:$0xff] }
 0xd5a   : > { %3879 = vmatmul.mubr.msk.f32.vlgmr.msra.gmra.mrb[4].mxu0 %vm1012_vm2, %v1773_v51  ;;  %v3476_v51 = vld [vmem:[%s5665_s11] ss:$0 sm:$0xff] }
 0xd5b   : > { %4102 = vmatpush3.bf16.msra.mxu0 %v4101_v31 }
 0xd5c   : > { %4104 = vmatprep.subr.bf16.mxu0 %v4103_v33 }
 0xd5f   : > { %4106 = vmatpush3.bf16.msra.mxu0 %v4105_v39 }
 0xd60   : > { %4108 = vmatprep.subr.bf16.mxu0 %v4107_v40 }
 0xd63   : > { %4110 = vmatpush3.bf16.msra.mxu0 %v4109_v44 }
 0xe2d   : > { %v1858_v53 = vpop.f32.mrb[4].mxu0 }
 0xe2e   : > { %v1859_v54 = vadd.f32 %v3473_v52, %v1858_v53  ;;  %v3880_v55 = vpop.f32.mrb[5].mxu0 }
 0xe2f   : > { %v2027_v55 = vld [vmem:[%s5668_s14 + $0xb8] sm:$0xff] }
 0xe30   : > { %v5049_v56 = vadd.f32 %v1859_v54, %v4859_v37  ;;  %v1893_v37 = vld [vmem:[%s5666_s12 + $0x8] sm:$0xff]  ;;  %v2026_v54 = vld [vmem:[%s5668_s14 + $0xb0] sm:$0xff] }
 0xe31   : > { %v4083_v63 = vpack.c.bf16 %v1895_v62, %v1893_v37  ;;  %v2012_v62 = vld [vmem:[%s5668_s14 + $0x40] sm:$0xff] }
 0xe32   : > { %v1865_v42 = vsel %vm955_vm1, %v5049_v56, 0.0 }
 0xe33   : > { %1866 = vadd.xlane.f32.xlu1 %v1865_v42  ;;  %4084 = vmatprep.subr.bf16.mxu1 %v4083_v63  ;;  %v4111_v42 = vpack.c.bf16 %v2027_v55, %v2026_v54  ;;  %v2013_v63 = vld [vmem:[%s5668_s14 + $0x48] sm:$0xff] }
 0xe34   : > { %4086 = vmatpush1.bf16.msra.mxu1 %v4085_v2  ;;  %v4117_v0 = vpack.c.bf16 %v2013_v63, %v2012_v62  ;;  %v2031_v2 = vld [vmem:[%s5668_s14 + $0xd8] sm:$0xff]  ;;  %v3484_v54 = vld [vmem:[%s5660_s6 + $0x88] sm:$0xff]  ;;  %v3489_v62 = vld [vmem:[%s5660_s6 + $0xb0] sm:$0xff] }
 0xe35   : > { %4088 = vmatprep.subr.bf16.mxu1 %v4087_v6  ;;  %4112 = vmatprep.subr.bf16.mxu0 %v4111_v42  ;;  %v4119_v4 = vpack.c.bf16 %v2031_v2, %v2030_v1  ;;  %v2015_v6 = vld [vmem:[%s5668_s14 + $0x58] sm:$0xff]  ;;  %v3483_v42 = vld [vmem:[%s5660_s6 + $0x80] sm:$0xff] }
 0xe36   : > { %v4121_v7 = vpack.c.bf16 %v2015_v6, %v2014_v5  ;;  %v3494_v1 = vld [vmem:[%s5660_s6 + $0xd8] sm:$0xff]  ;;  %v3493_v5 = vld [vmem:[%s5660_s6 + $0xd0] sm:$0xff] }
 0xe38   : > { %4090 = vmatpush1.bf16.msra.mxu1 %v4089_v9  ;;  %v2033_v9 = vld [vmem:[%s5668_s14 + $0xe8] sm:$0xff] }
 0xe39   : > { %4092 = vmatprep.subr.bf16.mxu1 %v4091_v12  ;;  %v4123_v10 = vpack.c.bf16 %v2033_v9, %v2032_v8  ;;  %v2017_v12 = vld [vmem:[%s5668_s14 + $0x68] sm:$0xff]  ;;  %v3498_v8 = vld [vmem:[%s5660_s6 + $0xf8] sm:$0xff]  ;;  %v3495_v9 = vld [vmem:[%s5660_s6 + $0xe0] sm:$0xff] }
 0xe3a   : > { %v4125_v13 = vpack.c.bf16 %v2017_v12, %v2016_v11  ;;  %v3497_v11 = vld [vmem:[%s5660_s6 + $0xf0] sm:$0xff] }
 0xe3b   : > { %v4145_v12 = vpack.c.bf16 %v3497_v11, %v3495_v9 }
 0xe3c   : > { %4094 = vmatpush1.bf16.msra.mxu1 %v4093_v15  ;;  %v2035_v15 = vld [vmem:[%s5668_s14 + $0xf8] sm:$0xff] }
 0xe3d   : > { %4096 = vmatprep.subr.bf16.mxu1 %v4095_v20  ;;  %v4127_v17 = vpack.c.bf16 %v2035_v15, %v2034_v14  ;;  %v4129_v20 = vpack.c.bf16 %v2019_v19, %v2018_v18  ;;  %v3481_v18 = vld [vmem:[%s5715_s0 + $0x1] ss:$0 sm:$0xff] }
 0xe40   : > { %4098 = vmatpush1.bf16.msra.mxu1 %v4097_v23  ;;  %v1913_v23 = vrot.slane %v1908_v21, %v4926_v16 }
 0xec0   : > { %v1867_v57 = vpop.xlane.xlu1 %1866 }
 0xec1   : > { %v1868_v58 = vmul.f32 0.015625, %v1867_v57  ;;  %v2010_v57 = vld [vmem:[%s5668_s14 + $0x30] sm:$0xff] }
 0xec3   : > { %v5054_v59 = vsub.f32 %v5049_v56, %v1868_v58  ;;  %v2011_v58 = vld [vmem:[%s5668_s14 + $0x38] sm:$0xff] }
 0xec5   : > { %v1870_v60 = vmul.f32 %v5054_v59, %v5054_v59 }
 0xec7   : > { %v1871_v61 = vsel %vm955_vm1, %v1870_v60, 0.0  ;;  %v2028_v60 = vld [vmem:[%s5668_s14 + $0xc0] sm:$0xff] }
 0xec8   : > { %1872 = vadd.xlane.f32.xlu0 %v1871_v61  ;;  %v2029_v61 = vld [vmem:[%s5668_s14 + $0xc8] sm:$0xff] }
 0xec9   : > { %v4115_v37 = vpack.c.bf16 %v2029_v61, %v2028_v60  ;;  %v3490_v60 = vld [vmem:[%s5660_s6 + $0xb8] sm:$0xff] }
 0xf55   : > { %v1873_v45 = vpop.xlane.xlu0 %1872 }
 0xf56   : > { %v1874_v46 = vmul.f32 0.015625, %v1873_v45  ;;  %v3478_v45 = vld [vmem:[%s5669_s15] ss:$0 sm:$0xff] }
 0xf58   : > { %v1875_v47 = vadd.f32 1e-06, %v1874_v46 }
 0xf5a   : > { %4290 = vrsqrt.f32 %v1875_v47 }
 0xf64   : > { %v4291_v48 = vpop.eup %4290 }
 0xf65   : > { %v1877_v50 = vmul.f32 %v4291_v48, %v5054_v59  ;;  %v4113_v59 = vpack.c.bf16 %v2011_v58, %v2010_v57  ;;  %v3485_v57 = vld [vmem:[%s5660_s6 + $0x90] sm:$0xff] }
 0xf66   : > { %v4133_v58 = vpack.c.bf16 %v3485_v57, %v3483_v42 }
 0xf67   : > { %v1884_v52 = vmul.f32 %v3475_v49, %v1877_v50  ;;  %4114 = vmatpush3.bf16.msra.mxu0 %v4113_v59  ;;  %v3488_v59 = vld [vmem:[%s5660_s6 + $0xa8] sm:$0xff] }
 0xf68   : > { %4116 = vmatprep.subr.bf16.mxu0 %v4115_v37  ;;  %v4135_v61 = vpack.c.bf16 %v3490_v60, %v3488_v59  ;;  %v3487_v37 = vld [vmem:[%s5660_s6 + $0xa0] sm:$0xff] }
 0xf69   : > { %v1891_v53 = vadd.f32 %v3476_v51, %v1884_v52  ;;  %v4137_v63 = vpack.c.bf16 %v3489_v62, %v3487_v37 }
 0xf6b   : > { %3477 = vmatmul.mubr.msk.f32.vlgmr.msra.gmra.mrb[20].mxu1 %vm1012_vm2, %v1891_v53  ;;  %4118 = vmatpush3.bf16.msra.mxu0 %v4117_v0  ;;  %v3492_v0 = vld [vmem:[%s5660_s6 + $0xc8] sm:$0xff] }
 0xf6c   : > { %2243 = vmatprep.mubr.f32.mxu1 %v4386_v3  ;;  %4120 = vmatprep.subr.bf16.mxu0 %v4119_v4  ;;  %v4139_v2 = vpack.c.bf16 %v3494_v1, %v3492_v0  ;;  %v3491_v4 = vld [vmem:[%s5660_s6 + $0xc0] sm:$0xff] }
 0xf6d   : > { %v4141_v6 = vpack.c.bf16 %v3493_v5, %v3491_v4 }
 0xf6f   : > { %4122 = vmatpush3.bf16.msra.mxu0 %v4121_v7  ;;  %v3496_v7 = vld [vmem:[%s5660_s6 + $0xe8] sm:$0xff] }
 0xf70   : > { %4124 = vmatprep.subr.bf16.mxu0 %v4123_v10  ;;  %v4143_v10 = vpack.c.bf16 %v3498_v8, %v3496_v7 }
 0xf73   : > { %4126 = vmatpush3.bf16.msra.mxu0 %v4125_v13 }
 0xf74   : > { %4128 = vmatprep.subr.bf16.mxu0 %v4127_v17 }
 0xf77   : > { %4130 = vmatpush3.bf16.msra.mxu0 %v4129_v20  ;;  %v3482_v20 = vld [vmem:[%s5659_s5 + $0x1] ss:$0 sm:$0xff] }
 0xf78   : > { %3901 = vmatprep.subr.mxu0 %v4386_v3 }
0x103e   : > { %v1989_v26 = vpop.f32.mrb[20].mxu1 }
0x103f   : > { %v1990_v27 = vadd.f32 %v1989_v26, %v1913_v23  ;;  %v1991_v28 = vpop.f32.mrb[21].mxu1 }
0x1040   : > { %v1992_v29 = vadd.f32 %v1991_v28, %v1917_v24  ;;  %v3499_v24 = vld [vmem:[%s5661_s7 + $0x2] sm:$0x3] }
0x1041   : > { %v1996_v30 = vmul.f32 0.70710677, %v1990_v27  ;;  %v1994_v38 = vmul.f32 0.5, %v1990_v27  ;;  %v2169_v26 = vrot.slane %v3499_v24, %v4926_v16 }
0x1042   : > { %v1997_v25 = vmul.f32 0.70710677, %v1992_v29  ;;  %v1995_v35 = vmul.f32 0.5, %v1992_v29 }
0x1043   : > { %4292 = verf.f32 %v1996_v30  ;;  %v2173_v30 = vrot.slane %v3499_v24, %v4938_v22 }
0x1044   : > { %4294 = verf.f32 %v1997_v25 }
0x104d   : > { %v4293_v31 = vpop.eup %4292 }
0x104e   : > { %v4295_v33 = vpop.eup %4294  ;;  %v2000_v34 = vadd.f32 1.0, %v4293_v31 }
0x104f   : > { %v2001_v36 = vadd.f32 1.0, %v4295_v33 }
0x1050   : > { %v2002_v40 = vmul.f32 %v2000_v34, %v1994_v38 }
0x1051   : > { %v2003_v39 = vmul.f32 %v2001_v36, %v1995_v35 }
0x1053   : > { %2100 = vmatprep.mubr.f32.mxu0 %v2003_v39 }
0x1054   : > { %2101 = vmatmul.mubr.f32.vlgmr.msra.gmra.mrb[6].mxu0 %v2002_v40 }
0x1055   : > { %3903 = vmatprep.mubr.msk.f32.mxu0 %vm4387_vm3, %v4386_v3 }
0x1127   : > { %v3750_v41 = vpop.f32.mrb[6].mxu0 }
0x1128   : > { %v3751_v43 = vpop.f32.mrb[7].mxu0 }
0x1129   : > { %v3752_v44 = vadd.f32 %v3751_v43, %v3750_v41 }
0x112b   : > { %v2106_v46 = vadd.f32 %v3752_v44, %v5049_v56  ;;  %v3486_v56 = vld [vmem:[%s5660_s6 + $0x98] sm:$0xff] }
0x112c   : > { %v4131_v55 = vpack.c.bf16 %v3486_v56, %v3484_v54 }
0x112d   : > { %v5224_v47 = vadd.f32 %v3478_v45, %v2106_v46 }
0x112e   : > { %4132 = vmatprep.subr.bf16.mxu1 %v4131_v55 }
0x112f   : > { %v2119_v48 = vsel %vm955_vm1, %v5224_v47, 0.0  ;;  %4134 = vmatpush1.bf16.msra.mxu1 %v4133_v58 }
0x1130   : > { %2120 = vadd.xlane.f32.xlu1 %v2119_v48  ;;  %4136 = vmatprep.subr.bf16.mxu1 %v4135_v61 }
0x1133   : > { %4138 = vmatpush1.bf16.msra.mxu1 %v4137_v63 }
0x1134   : > { %4140 = vmatprep.subr.bf16.mxu1 %v4139_v2 }
0x1137   : > { %4142 = vmatpush1.bf16.msra.mxu1 %v4141_v6 }
0x1138   : > { %4144 = vmatprep.subr.bf16.mxu1 %v4143_v10 }
0x113b   : > { %4146 = vmatpush1.bf16.msra.mxu1 %v4145_v12 }
0x113c   : > { %3881 = vmatprep.subr.mxu1 %v4386_v3 }
0x11bd   : > { %v2121_v49 = vpop.xlane.xlu1 %2120 }
0x11be   : > { %v2122_v50 = vmul.f32 0.015625, %v2121_v49 }
0x11c0   : > { %v2123_v51 = vsub.f32 %v5224_v47, %v2122_v50 }
0x11c2   : > { %v2124_v52 = vmul.f32 %v2123_v51, %v2123_v51 }
0x11c4   : > { %v2125_v53 = vsel %vm955_vm1, %v2124_v52, 0.0 }
0x11c5   : > { %2126 = vadd.xlane.f32.xlu1 %v2125_v53 }
0x1252   : > { %v2127_v13 = vpop.xlane.xlu1 %2126 }
0x1253   : > { %v2128_v14 = vmul.f32 0.015625, %v2127_v13 }
0x1255   : > { %v2129_v15 = vadd.f32 1e-06, %v2128_v14 }
0x1257   : > { %4296 = vrsqrt.f32 %v2129_v15 }
0x1261   : > { %v4297_v17 = vpop.eup %4296 }
0x1262   : > { %v2131_v19 = vmul.f32 %v4297_v17, %v2123_v51 }
0x1264   : > { %v2138_v21 = vmul.f32 %v3481_v18, %v2131_v19 }
0x1266   : > { %v2145_v23 = vadd.f32 %v3482_v20, %v2138_v21 }
0x1268   : > { %3500 = vmatmul.mubr.msk.f32.vlgmr.msra.gmra.mrb[22].mxu1 %vm1012_vm2, %v2145_v23 }
0x1269   : > { %3883 = vmatprep.mubr.msk.f32.mxu1 %vm4387_vm3, %v4386_v3 }
0x133b   : > { %v2245_v27 = vpop.f32.mrb[22].mxu1 }
0x133c   : > { %v2246_v28 = vadd.f32 %v2245_v27, %v2169_v26  ;;  %v2247_v29 = vpop.f32.mrb[23].mxu1 }
0x133d   : > { %v5301_v31 = vadd.f32 %v2247_v29, %v2173_v30 }
0x133e   : > { %2251 = vrot.lane.b32.xlu1 %v2246_v28, %s4389_s30  ;;  %s5721_s30 = smov 48  }
0x1342   : > { %2415 = vrot.lane.b32.xlu1 %v2246_v28, %s5716_s29 }
0x1346   : > { %2584 = vrot.lane.b32.xlu1 %v2246_v28, %s5717_s25 }
0x134a   : > { %2582 = vrot.lane.b32.xlu1 %v2246_v28, %s5718_s3 }
0x134e   : > { %2751 = vrot.lane.b32.xlu1 %v2246_v28, %s5719_s1 }
0x1352   : > { %2749 = vrot.lane.b32.xlu1 %v2246_v28, %s5720_s26 }
0x13b0   : > { %v2252_v25 = vpop.permute.xlu1 %2251 }
0x13b1   : > { %3882 = vmatpush3.xpose.msk.msra.mxu1 %vm1090_vm4, %v2252_v25 }
0x13b2   : > { %3886 = vmatprep.subr.mxu1 %v4386_v3 }
0x13b4   : > { %3884 = vmatmul.mubr.msk.f32.vlgmr.msra.gmra.mrb[24].mxu1 %vm1090_vm4, %v2246_v28  ;;  %v2416_v33 = vpop.permute.xlu1 %2415 }
0x13b5   : > { %3887 = vmatpush3.msk.msra.mxu1 %vm1182_vm5, %v5301_v31  ;;  %3888 = vmatprep.mubr.msk.f32.mxu1 %vm4387_vm3, %v4386_v3 }
0x13b6   : > { %3891 = vmatprep.subr.mxu1 %v4386_v3 }
0x13b8   : > { %v2585_v34 = vpop.permute.xlu1 %2584 }
0x13b9   : > { %3902 = vmatpush3.xpose.msk.msra.mxu0 %vm1090_vm4, %v2585_v34  ;;  %v3518_v34 = vld [vmem:[%s5662_s8 + $0x48] sm:$0xff] }
0x13ba   : > { %3911 = vmatprep.subr.mxu0 %v4386_v3 }
0x13bc   : > { %v2583_v35 = vpop.permute.xlu1 %2582 }
0x13bd   : > { %3904 = vmatmul.mubr.msk.f32.vlgmr.msra.gmra.mrb[8].mxu0 %vm1090_vm4, %v2583_v35  ;;  %v3519_v35 = vld [vmem:[%s5662_s8 + $0x50] sm:$0xff] }
0x13be   : > { %3913 = vmatprep.mubr.msk.f32.mxu0 %vm4387_vm3, %v4386_v3 }
0x13c0   : > { %v2752_v36 = vpop.permute.xlu1 %2751 }
0x13c1   : > { %3912 = vmatpush3.xpose.msk.msra.mxu0 %vm1090_vm4, %v2752_v36 }
0x13c2   : > { %4147 = vmatprep.subr.bf16.mxu0 %v4395_v32 }
0x13c4   : > { %v2750_v38 = vpop.permute.xlu1 %2749 }
0x13c5   : > { %3914 = vmatmul.mubr.msk.f32.vlgmr.msra.gmra.mrb[10].mxu0 %vm1090_vm4, %v2750_v38  ;;  %v3520_v38 = vld [vmem:[%s5662_s8 + $0x58] sm:$0xff] }
0x13c6   : > { %3937 = vmatprep.mubr.msk.f32.mxu0 %vm4387_vm3, %v4386_v3 }
0x1487   : > { %v2323_v39 = vpop.f32.mrb[24].mxu1 }
0x1488   : > { %v2327_v40 = vmul.f32 0.25, %v2323_v39  ;;  %v3885_v41 = vpop.f32.mrb[25].mxu1  ;;  %v4151_v39 = vpack.c.bf16 %v3520_v38, %v3519_v35  ;;  %v3568_v38 = vld [vmem:[%s5668_s14 + $0x190] sm:$0xff] }
0x1489   : > { %v3522_v41 = vld [vmem:[%s5662_s8 + $0x68] sm:$0xff] }
0x148a   : > { %v2328_v43 = vsel %vm1166_vm6, %v2327_v40, -inf }
0x148b   : > { %2329 = vmax.xlane.f32.xlu0 %v2328_v43 }
0x1490   : > { %v2656_v44 = vpop.f32.mrb[8].mxu0 }
0x1491   : > { %v3905_v45 = vpop.f32.mrb[9].mxu0  ;;  %v2660_v54 = vmul.f32 0.25, %v2656_v44  ;;  %v3523_v44 = vld [vmem:[%s5662_s8 + $0x70] sm:$0xff] }
0x1492   : > { %v3524_v45 = vld [vmem:[%s5662_s8 + $0x78] sm:$0xff] }
0x1493   : > { %v2661_v55 = vsel %vm1166_vm6, %v2660_v54, -inf }
0x1498   : > { %v2823_v46 = vpop.f32.mrb[10].mxu0 }
0x1499   : > { %v3915_v48 = vpop.f32.mrb[11].mxu0  ;;  %v2827_v56 = vmul.f32 0.25, %v2823_v46  ;;  %v4157_v46 = vpack.c.bf16 %v3524_v45, %v3523_v44  ;;  %v3553_v44 = vld [vmem:[%s5668_s14 + $0x118] sm:$0xff]  ;;  %v3570_v45 = vld [vmem:[%s5668_s14 + $0x1a0] sm:$0xff] }
0x149b   : > { %v2828_v42 = vsel %vm1166_vm6, %v2827_v56, -inf }
0x1518   : > { %v2330_v49 = vpop.xlane.xlu0 %2329 }
0x1519   : > { %v2331_v50 = vsub.f32 %v2327_v40, %v2330_v49  ;;  %v3521_v40 = vld [vmem:[%s5662_s8 + $0x60] sm:$0xff] }
0x151a   : > { %v4154_v43 = vpack.c.bf16 %v3522_v41, %v3521_v40 }
0x151b   : > { %v2332_v51 = vmul.f32 1.442695, %v2331_v50 }
0x151d   : > { %4298 = vpow2.f32 %v2332_v51 }
0x1527   : > { %v4299_v52 = vpop.eup %4298 }
0x1528   : > { %v2334_v53 = vsel %vm1166_vm6, %v4299_v52, 0.0 }
0x1529   : > { %2335 = vadd.xlane.f32.xlu0 %v2334_v53 }
0x153f   : > { %2417 = vrot.lane.b32.xlu0 %v2246_v28, %s5721_s30 }
0x155e   : > { %2662 = vmax.xlane.f32.xlu0 %v2661_v55 }
0x1562   : > { %2829 = vmax.xlane.f32.xlu0 %v2828_v42 }
0x15b6   : > { %v2336_v57 = vpop.xlane.xlu0 %2335 }
0x15b7   : > { %4300 = vrcp.f32 %v2336_v57 }
0x15ba   : > { %v2418_v60 = vpop.permute.xlu0 %2417 }
0x15c1   : > { %v4301_v58 = vpop.eup %4300 }
0x15c2   : > { %v2338_v59 = vmul.f32 %v4301_v58, %v4299_v52 }
0x15c4   : > { %3889 = vmatmul.mubr.msk.f32.vlgmr.msra.gmra.mrb[26].mxu1 %vm1178_vm7, %v2338_v59  ;;  %v3526_v59 = vld [vmem:[%s5663_s9 + $0x1] ss:$0 sm:$0xff] }
0x15c5   : > { %3892 = vmatpush3.xpose.msk.msra.mxu1 %vm1090_vm4, %v2418_v60  ;;  %3893 = vmatprep.mubr.msk.f32.mxu1 %vm4387_vm3, %v4386_v3 }
0x15c6   : > { %3896 = vmatprep.subr.mxu1 %v4386_v3 }
0x15c8   : > { %3894 = vmatmul.mubr.msk.f32.vlgmr.msra.gmra.mrb[28].mxu1 %vm1090_vm4, %v2416_v33  ;;  %v3517_v33 = vld [vmem:[%s5662_s8 + $0x40] sm:$0xff] }
0x15c9   : > { %3898 = vmatprep.mubr.msk.f32.mxu1 %vm4387_vm3, %v4386_v3  ;;  %v4148_v36 = vpack.c.bf16 %v3518_v34, %v3517_v33  ;;  %v3567_v33 = vld [vmem:[%s5668_s14 + $0x188] sm:$0xff]  ;;  %v3550_v34 = vld [vmem:[%s5668_s14 + $0x100] sm:$0xff] }
0x15cb   : > { %4149 = vmatpush3.bf16.msra.mxu0 %v4148_v36  ;;  %v3551_v36 = vld [vmem:[%s5668_s14 + $0x108] sm:$0xff] }
0x15cc   : > { %4150 = vmatprep.subr.bf16.mxu0 %v4395_v32  ;;  %v4177_v40 = vpack.c.bf16 %v3551_v36, %v3550_v34 }
0x15cf   : > { %4152 = vmatpush3.bf16.msra.mxu0 %v4151_v39  ;;  %v3569_v39 = vld [vmem:[%s5668_s14 + $0x198] sm:$0xff] }
0x15d0   : > { %4153 = vmatprep.subr.bf16.mxu0 %v4395_v32  ;;  %v4179_v41 = vpack.c.bf16 %v3569_v39, %v3568_v38 }
0x15d3   : > { %4155 = vmatpush3.bf16.msra.mxu0 %v4154_v43  ;;  %v3552_v43 = vld [vmem:[%s5668_s14 + $0x110] sm:$0xff] }
0x15d4   : > { %4156 = vmatprep.subr.bf16.mxu0 %v4395_v32 }
0x15d7   : > { %4158 = vmatpush3.bf16.msra.mxu0 %v4157_v46  ;;  %v3571_v46 = vld [vmem:[%s5668_s14 + $0x1a8] sm:$0xff] }
0x15eb   : > { %v2663_v61 = vpop.xlane.xlu0 %2662 }
0x15ec   : > { %v2664_v37 = vsub.f32 %v2660_v54, %v2663_v61 }
0x15ee   : > { %v2665_v62 = vmul.f32 1.442695, %v2664_v37 }
0x15ef   : > { %v2830_v1 = vpop.xlane.xlu0 %2829 }
0x15f0   : > { %4302 = vpow2.f32 %v2665_v62  ;;  %v2831_v4 = vsub.f32 %v2827_v56, %v2830_v1 }
0x15f2   : > { %v2832_v6 = vmul.f32 1.442695, %v2831_v4 }
0x15f4   : > { %4304 = vpow2.f32 %v2832_v6  ;;  %v3535_v6 = vld [vmem:[%s5666_s12 + $0x98] sm:$0xff] }
0x15fa   : > { %v4303_v63 = vpop.eup %4302 }
0x15fb   : > { %v2667_v0 = vsel %vm1166_vm6, %v4303_v63, 0.0 }
0x15fc   : > { %2668 = vadd.xlane.f32.xlu0 %v2667_v0 }
0x15fe   : > { %v4305_v13 = vpop.eup %4304 }
0x15ff   : > { %v2834_v14 = vsel %vm1166_vm6, %v4305_v13, 0.0 }
0x1612   : > { %2505 = vrot.lane.b32.xlu0 %v5301_v31, %s5716_s29  ;;  %s621_s29 = scalar_lea.vmem [#allocation2], %s620_s23 }
0x1689   : > { %v2669_v2 = vpop.xlane.xlu0 %2668 }
0x168d   : > { %v2506_v5 = vpop.permute.xlu0 %2505 }
0x168e   : > { %3897 = vmatpush3.msk.msra.mxu1 %vm1182_vm5, %v2506_v5 }
0x168f   : > { %3906 = vmatprep.subr.mxu1 %v4386_v3 }
0x1697   : > { %v5337_v7 = vpop.f32.mrb[26].mxu1 }
0x1698   : > { %v3890_v8 = vpop.f32.mrb[27].mxu1 }
0x1699   : > { %v3532_v8 = vld [vmem:[%s5666_s12 + $0x80] sm:$0xff] }
0x169b   : > { %v2489_v9 = vpop.f32.mrb[28].mxu1 }
0x169c   : > { %v2493_v10 = vmul.f32 0.25, %v2489_v9  ;;  %v3895_v11 = vpop.f32.mrb[29].mxu1  ;;  %v3534_v9 = vld [vmem:[%s5666_s12 + $0x90] sm:$0xff] }
0x169d   : > { %v3537_v11 = vld [vmem:[%s5666_s12 + $0xa8] sm:$0xff] }
0x169e   : > { %v2494_v12 = vsel %vm1166_vm6, %v2493_v10, -inf }
0x169f   : > { %2495 = vmax.xlane.f32.xlu1 %v2494_v12  ;;  %v3539_v12 = vld [vmem:[%s5666_s12 + $0xb8] sm:$0xff] }
0x16a3   : > { %2835 = vadd.xlane.f32.xlu1 %v2834_v14  ;;  %v3536_v14 = vld [vmem:[%s5666_s12 + $0xa0] sm:$0xff] }
0x16b4   : > { %2672 = vrot.lane.b32.xlu1 %v5301_v31, %s5718_s3 }
0x172c   : > { %v2496_v15 = vpop.xlane.xlu1 %2495 }
0x172d   : > { %v2497_v17 = vsub.f32 %v2493_v10, %v2496_v15  ;;  %v4161_v10 = vpack.c.bf16 %v3534_v9, %v3532_v8  ;;  %v3538_v15 = vld [vmem:[%s5666_s12 + $0xb0] sm:$0xff]  ;;  %v3577_v9 = vld [vmem:[%s5668_s14 + $0x1d8] sm:$0xff] }
0x172e   : > { %v3576_v8 = vld [vmem:[%s5668_s14 + $0x1d0] sm:$0xff] }
0x172f   : > { %v2498_v18 = vmul.f32 1.442695, %v2497_v17  ;;  %v4165_v17 = vpack.c.bf16 %v3538_v15, %v3536_v14  ;;  %v3578_v14 = vld [vmem:[%s5668_s14 + $0x1e0] sm:$0xff]  ;;  %v3579_v15 = vld [vmem:[%s5668_s14 + $0x1e8] sm:$0xff] }
0x1730   : > { %v2836_v21 = vpop.xlane.xlu1 %2835 }
0x1731   : > { %4306 = vpow2.f32 %v2498_v18  ;;  %v3541_v18 = vld [vmem:[%s5666_s12 + $0xc8] sm:$0xff] }
0x1734   : > { %v2673_v23 = vpop.permute.xlu1 %2672 }
0x173b   : > { %v4307_v19 = vpop.eup %4306 }
0x173c   : > { %v2500_v20 = vsel %vm1166_vm6, %v4307_v19, 0.0 }
0x173d   : > { %2501 = vadd.xlane.f32.xlu1 %v2500_v20 }
0x174e   : > { %2839 = vrot.lane.b32.xlu1 %v5301_v31, %s5720_s26 }
0x17ca   : > { %v2502_v24 = vpop.xlane.xlu1 %2501 }
0x17cb   : > { %4308 = vrcp.f32 %v2502_v24 }
0x17cc   : > { %4310 = vrcp.f32 %v2669_v2 }
0x17cd   : > { %4312 = vrcp.f32 %v2836_v21  ;;  %v3540_v21 = vld [vmem:[%s5666_s12 + $0xc0] sm:$0xff] }
0x17ce   : > { %v2840_v25 = vpop.permute.xlu1 %2839 }
0x17d5   : > { %v4309_v26 = vpop.eup %4308 }
0x17d6   : > { %v2504_v27 = vmul.f32 %v4309_v26, %v4307_v19  ;;  %v4311_v28 = vpop.eup %4310  ;;  %v3543_v19 = vld [vmem:[%s5666_s12 + $0xd8] sm:$0xff]  ;;  %v3545_v26 = vld [vmem:[%s5666_s12 + $0xe8] sm:$0xff] }
0x17d7   : > { %v2671_v29 = vmul.f32 %v4311_v28, %v4303_v63  ;;  %v4313_v30 = vpop.eup %4312  ;;  %v4167_v20 = vpack.c.bf16 %v3543_v19, %v3541_v18  ;;  %v3544_v28 = vld [vmem:[%s5666_s12 + $0xe0] sm:$0xff]  ;;  %v3563_v19 = vld [vmem:[%s5668_s14 + $0x168] sm:$0xff] }
0x17d8   : > { %3899 = vmatmul.mubr.msk.f32.vlgmr.msra.gmra.mrb[30].mxu1 %vm1178_vm7, %v2504_v27  ;;  %v2838_v31 = vmul.f32 %v4313_v30, %v4305_v13  ;;  %v4163_v13 = vpack.c.bf16 %v3539_v12, %v3537_v11  ;;  %v3547_v27 = vld [vmem:[%s5666_s12 + $0xf8] sm:$0xff]  ;;  %v3546_v30 = vld [vmem:[%s5666_s12 + $0xf0] sm:$0xff]  ;;  %v3562_v18 = vld [vmem:[%s5668_s14 + $0x160] sm:$0xff] }
0x17d9   : > { %3907 = vmatpush3.msk.msra.mxu1 %vm1182_vm5, %v2673_v23  ;;  %3908 = vmatprep.mubr.msk.f32.mxu1 %vm4387_vm3, %v4386_v3  ;;  %v3542_v23 = vld [vmem:[%s5666_s12 + $0xd0] sm:$0xff]  ;;  %v3561_v12 = vld [vmem:[%s5668_s14 + $0x158] sm:$0xff] }
0x17da   : > { %3916 = vmatprep.subr.mxu1 %v4386_v3  ;;  %v4169_v24 = vpack.c.bf16 %v3542_v23, %v3540_v21  ;;  %v3560_v11 = vld [vmem:[%s5668_s14 + $0x150] sm:$0xff]  ;;  %v3581_v23 = vld [vmem:[%s5668_s14 + $0x1f8] sm:$0xff] }
0x17db   : > { %v3580_v21 = vld [vmem:[%s5668_s14 + $0x1f0] sm:$0xff] }
0x17dc   : > { %3909 = vmatmul.mubr.msk.f32.vlgmr.msra.gmra.mrb[32].mxu1 %vm1178_vm7, %v2671_v29  ;;  %v4171_v29 = vpack.c.bf16 %v3547_v27, %v3545_v26  ;;  %v3564_v26 = vld [vmem:[%s5668_s14 + $0x170] sm:$0xff]  ;;  %v3565_v27 = vld [vmem:[%s5668_s14 + $0x178] sm:$0xff] }
0x17dd   : > { %3917 = vmatpush3.msk.msra.mxu1 %vm1182_vm5, %v2840_v25  ;;  %3918 = vmatprep.mubr.msk.f32.mxu1 %vm4387_vm3, %v4386_v3  ;;  %v4173_v25 = vpack.c.bf16 %v3546_v30, %v3544_v28  ;;  %v4205_v28 = vpack.c.bf16 %v3565_v27, %v3564_v26 }
0x17e0   : > { %3919 = vmatmul.mubr.msk.f32.vlgmr.msra.gmra.mrb[34].mxu1 %vm1178_vm7, %v2838_v31  ;;  %v3566_v31 = vld [vmem:[%s5668_s14 + $0x180] sm:$0xff] }
0x17e1   : > { %3150 = vmatprep.mubr.f32.mxu1 %v4386_v3  ;;  %v4175_v35 = vpack.c.bf16 %v3567_v33, %v3566_v31 }
0x17e3   : > { %4176 = vmatprep.subr.bf16.mxu0 %v4175_v35 }
0x18ab   : > { %v2578_v48 = vpop.f32.mrb[30].mxu1 }
0x18ac   : > { %2917 = vrot.lane.b32.xlu0 %v2578_v48, %s5719_s1  ;;  %v3900_v49 = vpop.f32.mrb[31].mxu1  ;;  %v4181_v48 = vpack.c.bf16 %v3553_v44, %v3552_v43  ;;  %s3394_s1 = sshll.u32 %s621_s29, 4  ;;  %s5614_s1 = int_to_ptr.vmem [resolvable:$true] %s3394_s1 }
0x18ad   : > { %v4183_v49 = vpack.c.bf16 %v3571_v46, %v3570_v45  ;;  %s4322_s20 = scalar_lea.vmem %s5614_s1, 16  ;;  %p4329_p0 = scmp.lt.s32.totalorder %s5614_s1, %s4327_s28 }
0x18ae   : > { %p4323_p11 = scmp.ne.s32.totalorder %s5614_s1, %s4322_s20 }
0x18af   : > { %v2745_v50 = vpop.f32.mrb[32].mxu1 }
0x18b0   : > { %2921 = vrot.lane.b32.xlu1 %v2745_v50, %s5717_s25  ;;  %v3910_v51 = vpop.f32.mrb[33].mxu1  ;;  %v3554_v50 = vld [vmem:[%s5668_s14 + $0x120] sm:$0xff]  ;;  %p4324_p12 = pnand %p4323_p11, %p4540_p5 }
0x18b1   : > { %v3555_v51 = vld [vmem:[%s5668_s14 + $0x128] sm:$0xff] }
0x18b2   : > { %p4325_p13 = pneg %p4324_p12 }
0x18b3   : > { %v2912_v52 = vpop.f32.mrb[34].mxu1 }
0x18b4   : > { %2925 = vrot.lane.b32.xlu0 %v2912_v52, %s5721_s30  ;;  %v3920_v53 = vpop.f32.mrb[35].mxu1  ;;  %v4185_v52 = vpack.c.bf16 %v3555_v51, %v3554_v50  ;;  %v3583_v50 = vld [vmem:[%s5669_s15 + $0x1] ss:$0 sm:$0xff]  ;;  %s5723_s30 = sld [smem:[#allocation17_spill]] }
0x18ba   : > { %s5612_s26 = scalar_lea.hbm %s5723_s30, %s3585_s24 }
0x191e   : > { %v2918_v54 = vpop.permute.xlu0 %2917 }
0x191f   : > { %v2928_v55 = vsel %vm1090_vm4, %v5337_v7, %v2918_v54 }
0x1922   : > { %v2922_v56 = vpop.permute.xlu1 %2921 }
0x1923   : > { %v2929_v42 = vsel %vm1770_vm8, %v2928_v55, %v2922_v56 }
0x1926   : > { %v2926_v57 = vpop.permute.xlu0 %2925 }
0x1927   : > { %v2930_v58 = vsel %vm1772_vm9, %v2929_v42, %v2926_v57  ;;  %v3530_v42 = vld [vmem:[%s5664_s10 + $0x1] ss:$0 sm:$0xff] }
0x1928   : > { %3938 = vmatmul.mubr.msk.f32.vlgmr.msra.gmra.mrb[12].mxu0 %vm1012_vm2, %v2930_v58  ;;  %v3531_v58 = vld [vmem:[%s5665_s11 + $0x1] ss:$0 sm:$0xff] }
0x1929   : > { %4178 = vmatpush3.bf16.msra.mxu0 %v4177_v40 }
0x192a   : > { %4180 = vmatprep.subr.bf16.mxu0 %v4179_v41 }
0x192d   : > { %4182 = vmatpush3.bf16.msra.mxu0 %v4181_v48 }
0x192e   : > { %4184 = vmatprep.subr.bf16.mxu0 %v4183_v49 }
0x1931   : > { %4186 = vmatpush3.bf16.msra.mxu0 %v4185_v52 }
0x19fb   : > { %v3017_v60 = vpop.f32.mrb[12].mxu0 }
0x19fc   : > { %v3018_v61 = vadd.f32 %v3526_v59, %v3017_v60  ;;  %v3939_v37 = vpop.f32.mrb[13].mxu0 }
0x19fd   : > { %v3573_v37 = vld [vmem:[%s5668_s14 + $0x1b8] sm:$0xff] }
0x19fe   : > { %v5396_v62 = vadd.f32 %v3018_v61, %v5224_v47  ;;  %v3533_v47 = vld [vmem:[%s5666_s12 + $0x88] sm:$0xff]  ;;  %v3572_v61 = vld [vmem:[%s5668_s14 + $0x1b0] sm:$0xff] }
0x19ff   : > { %v4159_v7 = vpack.c.bf16 %v3535_v6, %v3533_v47  ;;  %v3558_v47 = vld [vmem:[%s5668_s14 + $0x140] sm:$0xff]  ;;  %v3559_v6 = vld [vmem:[%s5668_s14 + $0x148] sm:$0xff] }
0x1a00   : > { %v3026_v63 = vsel %vm955_vm1, %v5396_v62, 0.0 }
0x1a01   : > { %3027 = vadd.xlane.f32.xlu1 %v3026_v63  ;;  %4160 = vmatprep.subr.bf16.mxu1 %v4159_v7  ;;  %v4187_v63 = vpack.c.bf16 %v3573_v37, %v3572_v61  ;;  %v4193_v7 = vpack.c.bf16 %v3559_v6, %v3558_v47  ;;  %v3301_v61 = vld [vmem:[%s5672_s18 + $0x18] sm:$0xff] }
0x1a02   : > { %4162 = vmatpush1.bf16.msra.mxu1 %v4161_v10  ;;  %v4195_v10 = vpack.c.bf16 %v3577_v9, %v3576_v8  ;;  %v3281_v9 = vld [vmem:[%s5671_s17] sm:$0x1] }
0x1a03   : > { %4164 = vmatprep.subr.bf16.mxu1 %v4163_v13  ;;  %4188 = vmatprep.subr.bf16.mxu0 %v4187_v63  ;;  %v4197_v13 = vpack.c.bf16 %v3561_v12, %v3560_v11  ;;  %v3302_v63 = vld [vmem:[%s5672_s18 + $0x20] sm:$0xff] }
0x1a04   : > { %v3306_v12 = vld [vmem:[%s5722_s19] sm:$0x1]  ;;  %s4328_s19 = scalar_lea.vmem %s4327_s28, 32 }
0x1a05   : > { %p4330_p1 = scmp.lt.s32.totalorder %s4328_s19, %s4322_s20 }
0x1a06   : > { %4166 = vmatpush1.bf16.msra.mxu1 %v4165_v17  ;;  %v4199_v17 = vpack.c.bf16 %v3579_v15, %v3578_v14 }
0x1a07   : > { %4168 = vmatprep.subr.bf16.mxu1 %v4167_v20  ;;  %v4201_v20 = vpack.c.bf16 %v3563_v19, %v3562_v18  ;;  %p4331_p2 = por %p4330_p1, %p4329_p0 }
0x1a09   : > { %p4332_p3 = pnand %p4331_p2, %p4325_p13 }
0x1a0a   : > { %4170 = vmatpush1.bf16.msra.mxu1 %v4169_v24  ;;  %v4203_v24 = vpack.c.bf16 %v3581_v23, %v3580_v21 }
0x1a0b   : > { %4172 = vmatprep.subr.bf16.mxu1 %v4171_v29  ;;  %v3548_v29 = vld [vmem:[%s5667_s13 + $0x2] sm:$0x3] }
0x1a0c   : > { %v3076_v30 = vrot.slane %v3548_v29, %v4926_v16 }
0x1a0e   : > { %4174 = vmatpush1.bf16.msra.mxu1 %v4173_v25  ;;  %v3080_v25 = vrot.slane %v3548_v29, %v4938_v22 }
0x1a0f   : > { %4207 = vmatprep.subr.bf16.mxu1 %v4395_v32 }
0x1a8e   : > { %v3028_v0 = vpop.xlane.xlu1 %3027 }
0x1a8f   : > { %v3029_v1 = vmul.f32 0.015625, %v3028_v0  ;;  %v3556_v0 = vld [vmem:[%s5668_s14 + $0x130] sm:$0xff] }
0x1a91   : > { %v5401_v2 = vsub.f32 %v5396_v62, %v3029_v1  ;;  %v3557_v1 = vld [vmem:[%s5668_s14 + $0x138] sm:$0xff] }
0x1a93   : > { %v3031_v4 = vmul.f32 %v5401_v2, %v5401_v2 }
0x1a95   : > { %v3032_v5 = vsel %vm955_vm1, %v3031_v4, 0.0  ;;  %v3575_v4 = vld [vmem:[%s5668_s14 + $0x1c8] sm:$0xff] }
0x1a96   : > { %3033 = vadd.xlane.f32.xlu0 %v3032_v5 }
0x1b23   : > { %v3034_v53 = vpop.xlane.xlu0 %3033 }
0x1b24   : > { %v3035_v54 = vmul.f32 0.015625, %v3034_v53 }
0x1b26   : > { %v3036_v56 = vadd.f32 1e-06, %v3035_v54 }
0x1b28   : > { %4314 = vrsqrt.f32 %v3036_v56 }
0x1b32   : > { %v4315_v55 = vpop.eup %4314 }
0x1b33   : > { %v3038_v57 = vmul.f32 %v4315_v55, %v5401_v2  ;;  %v4189_v2 = vpack.c.bf16 %v3557_v1, %v3556_v0  ;;  %v3303_v0 = vld [vmem:[%s5672_s18 + $0x28] sm:$0xff] }
0x1b34   : > { %v4214_v1 = vpack.c.bf16 %v3303_v0, %v3302_v63 }
0x1b35   : > { %v3045_v59 = vmul.f32 %v3530_v42, %v3038_v57  ;;  %4190 = vmatpush3.bf16.msra.mxu0 %v4189_v2  ;;  %v3304_v2 = vld [vmem:[%s5672_s18 + $0x30] sm:$0xff] }
0x1b37   : > { %v3052_v60 = vadd.f32 %v3531_v58, %v3045_v59  ;;  %v3298_v58 = vld [vmem:[%s5672_s18] sm:$0xff]  ;;  %v3299_v59 = vld [vmem:[%s5672_s18 + $0x8] sm:$0xff] }
0x1b39   : > { %3549 = vmatmul.mubr.msk.f32.vlgmr.msra.gmra.mrb[36].mxu1 %vm1012_vm2, %v3052_v60  ;;  %v4208_v60 = vpack.c.bf16 %v3299_v59, %v3298_v58 }
0x1b3a   : > { %3956 = vmatprep.mubr.msk.f32.mxu1 %vm4387_vm3, %v4386_v3  ;;  %v3574_v3 = vld [vmem:[%s5668_s14 + $0x1c0] sm:$0xff] }
0x1b3b   : > { %v4191_v5 = vpack.c.bf16 %v3575_v4, %v3574_v3  ;;  %4209 = vmatpush3.bf16.msra.mxu1 %v4208_v60  ;;  %v3305_v3 = vld [vmem:[%s5672_s18 + $0x38] sm:$0xff] }
0x1b3c   : > { %4210 = vmatprep.subr.bf16.mxu1 %v4395_v32  ;;  %v4217_v4 = vpack.c.bf16 %v3305_v3, %v3304_v2 }
0x1b3d   : > { %4192 = vmatprep.subr.bf16.mxu0 %v4191_v5 }
0x1b3e   : > { %4194 = vmatpush3.bf16.msra.mxu0 %v4193_v7 }
0x1b3f   : > { %4196 = vmatprep.subr.bf16.mxu0 %v4195_v10 }
0x1b42   : > { %4198 = vmatpush3.bf16.msra.mxu0 %v4197_v13 }
0x1b43   : > { %4200 = vmatprep.subr.bf16.mxu0 %v4199_v17 }
0x1b46   : > { %4202 = vmatpush3.bf16.msra.mxu0 %v4201_v20 }
0x1b47   : > { %4204 = vmatprep.subr.bf16.mxu0 %v4203_v24 }
0x1b4a   : > { %4206 = vmatpush3.bf16.msra.mxu0 %v4205_v28 }
0x1c0c   : > { %v3152_v31 = vpop.f32.mrb[36].mxu1 }
0x1c0d   : > { %v3153_v33 = vadd.f32 %v3152_v31, %v3076_v30  ;;  %v3154_v34 = vpop.f32.mrb[37].mxu1 }
0x1c0e   : > { %v3155_v35 = vadd.f32 %v3154_v34, %v3080_v25 }
0x1c0f   : > { %v3159_v36 = vmul.f32 0.70710677, %v3153_v33  ;;  %v3157_v45 = vmul.f32 0.5, %v3153_v33 }
0x1c10   : > { %v3160_v38 = vmul.f32 0.70710677, %v3155_v35  ;;  %v3158_v43 = vmul.f32 0.5, %v3155_v35 }
0x1c11   : > { %4316 = verf.f32 %v3159_v36 }
0x1c12   : > { %4318 = verf.f32 %v3160_v38 }
0x1c1b   : > { %v4317_v39 = vpop.eup %4316 }
0x1c1c   : > { %v4319_v40 = vpop.eup %4318  ;;  %v3163_v41 = vadd.f32 1.0, %v4317_v39 }
0x1c1d   : > { %v3164_v44 = vadd.f32 1.0, %v4319_v40 }
0x1c1e   : > { %v3165_v48 = vmul.f32 %v3163_v41, %v3157_v45 }
0x1c1f   : > { %v3166_v46 = vmul.f32 %v3164_v44, %v3158_v43 }
0x1c21   : > { %3264 = vmatprep.mubr.f32.mxu0 %v3166_v46 }
0x1c22   : > { %3265 = vmatmul.mubr.f32.vlgmr.msra.gmra.mrb[14].mxu0 %v3165_v48 }
0x1cf5   : > { %v3810_v16 = vpop.f32.mrb[14].mxu0 }
0x1cf6   : > { %v3811_v22 = vpop.f32.mrb[15].mxu0 }
0x1cf7   : > { %v3812_v49 = vadd.f32 %v3811_v22, %v3810_v16 }
0x1cf9   : > { %v3270_v51 = vadd.f32 %v3812_v49, %v5396_v62  ;;  %v3300_v62 = vld [vmem:[%s5672_s18 + $0x10] sm:$0xff] }
0x1cfa   : > { %v4211_v37 = vpack.c.bf16 %v3301_v61, %v3300_v62 }
0x1cfb   : > { %v3279_v52 = vadd.f32 %v3583_v50, %v3270_v51 }
0x1cfc   : > { %4212 = vmatpush3.bf16.msra.mxu1 %v4211_v37 }
0x1cfd   : > { %v3283_v53 = vsel %vm3282_vm10, %v3279_v52, 0.0  ;;  %4213 = vmatprep.subr.bf16.mxu1 %v4395_v32 }
0x1cfe   : > { %3284 = vadd.xlane.f32.xlu0 %v3283_v53 }
0x1d00   : > { %4215 = vmatpush3.bf16.msra.mxu1 %v4214_v1 }
0x1d01   : > { %4216 = vmatprep.subr.bf16.mxu1 %v4395_v32  ;;  %v3280_v32 = vld [vmem:[%s5670_s16] sm:$0x1] }
0x1d04   : > { %4218 = vmatpush3.bf16.msra.mxu1 %v4217_v4 }
0x1d8b   : > { %v3285_v54 = vpop.xlane.xlu0 %3284 }
0x1d8c   : > { %v3286_v56 = vmul.f32 0.015625, %v3285_v54 }
0x1d8e   : > { %v3287_v55 = vsub.f32 %v3279_v52, %v3286_v56 }
0x1d90   : > { %v3288_v42 = vmul.f32 %v3287_v55, %v3287_v55 }
0x1d92   : > { %v3289_v57 = vsel %vm3282_vm10, %v3288_v42, 0.0 }
0x1d93   : > { %3290 = vadd.xlane.f32.xlu1 %v3289_v57 }
0x1e20   : > { %v3291_v5 = vpop.xlane.xlu1 %3290 }
0x1e21   : > { %v3292_v47 = vmul.f32 0.015625, %v3291_v5 }
0x1e23   : > { %v3293_v6 = vadd.f32 1e-06, %v3292_v47 }
0x1e25   : > { %4320 = vrsqrt.f32 %v3293_v6 }
0x1e2f   : > { %v4321_v7 = vpop.eup %4320 }
0x1e30   : > { %v3295_v8 = vmul.f32 %v4321_v7, %v3287_v55 }
0x1e32   : > { %v3296_v10 = vmul.f32 %v3295_v8, %v3280_v32 }
0x1e34   : > { %v3297_v11 = vadd.f32 %v3296_v10, %v3281_v9 }
0x1e36   : > { %3957 = vmatmul.mubr.msk.f32.vlgmr.msra.gmra.mrb[38].mxu1 %vm1012_vm2, %v3297_v11 }
0x1f09   : > { %v3376_v13 = vpop.f32.mrb[38].mxu1 }
0x1f0a   : > { %v3377_v14 = vadd.f32 %v3376_v13, %v3306_v12  ;;  %v3958_v15 = vpop.f32.mrb[39].mxu1 }
0x1f0c   : > { %3380 = vst [vmem:[%s621_s29] sm:$0x1] %v3377_v14 }
0x1f0d   : > { %4335 = shalt.err (!%p4332_p3)
}
0x1f0e   : > { %s4336_s23 = scalar_lea.hbm %s5612_s26, 16  ;;  %s4340_s3 = scalar_lea.hbm %s5723_s30, 32 }
0x1f0f   : > { %p4337_p4 = scmp.ne.s32.totalorder %s5612_s26, %s4336_s23  ;;  %p4341_p9 = scmp.lt.u32.totalorder %s5612_s26, %s5723_s30 }
0x1f10   : > { %p4342_p10 = scmp.lt.u32.totalorder %s4340_s3, %s4336_s23  ;;  %p4344_p12 = scmp.lt.u32.totalorder %s4336_s23, %s5612_s26 }
0x1f11   : > { %p4338_p7 = pnand %p4337_p4, %p4540_p5 }
0x1f12   : > { %p4343_p11 = por %p4342_p10, %p4341_p9 }
0x1f13   : > { %p4339_p8 = pneg %p4338_p7 }
0x1f14   : > { %p4345_p13 = por %p4344_p12, %p4343_p11 }
0x1f16   : > { %p4346_p0 = pnand %p4345_p13, %p4339_p8 }
0x1f18   : > { %4349 = shalt.err (!%p4346_p0)
}
0x1f19   : > { %4220 = dma.vmem_to_hbm [thread:$0]  (%p4540_p5), %s5614_s1, 16, %s5612_s26, %s3382_s27  }
0x1f1a PF: > { %s5724_s20 = sld [smem:[#allocation7_spill]]  ;;  %s5725_s28 = sld [smem:[#allocation5_spill]] }
0x1f20   : > { %p4226_p1 = scmp.ge.s32.totalorder %s5724_s20, 2  ;;  %s3406_s24 = sand.u32 1, %s5725_s28  }
0x1f21   : > { %s3407_s29 = scalar_lea.sflag [#allocation3], %s3406_s24 }
0x1f22   : > { %p4223_p2 = pnand %p4226_p1, %p4544_p6 }
0x1f24   : > { %4367 = dma.done.wait (!%p4223_p2), %s3407_s29, 16  }
0x1f25   : > { %4369 = vsyncadd (!%p4223_p2), %s3407_s29, 4294967280  ;;  %s5727_s24 = sld [smem:[#allocation8_spill]]  ;;  %s5728_s23 = sld [smem:[#allocation6_spill]] }
0x1f26   : > { %s5729_s3 = sld [smem:[#allocation9_spill]]  ;;  %s5730_s1 = smov %s4376_s22 }
0x1f2b   : > { %p30_p3 = scmp.ge.s32.totalorder %s5727_s24, 4   ;;  %s5731_s22 = smov %s5728_s23 }
0x1f2c   : > { %s5732_s23 = smov %s5729_s3 }
0x1f2d   :  { %32 = sbr.rel (!%p30_p3) target bundleno = 11 (0xb), region = 147 }
0x1f34   :  { %3411 = vsyncpa [#allocation3], 1 }
0x1f35   :  { %3413 = vsyncpa [#allocation3 + $0x1], 1 }

</bundles_post_ra>
